<compile_context>
chip_gen: v7x
topology: tpu7x:2x2x1
jax: 0.10.0
libtpu: 0.0.40
codegen_flags: <defaults>
</compile_context>

<pallas_src>
import math

import jax
import jax.numpy as jnp
from jax import lax
from jax.experimental import pallas as pl
from jax.experimental.pallas import tpu as pltpu

BN_EPS = 1e-5                         # PyTorch BatchNorm2d default
DEFAULT_TILE_M = 2048                 # v7x-safe; v5e/v6e may use 4096 with 64 MiB limit
NUM_SPLITS = 2                        # leading "parallel" axis (engaged only when useful)
VMEM_LIMIT_BYTES = 48 * 1024 * 1024   # under v7x's 64 MiB physical; fine on v5e/v6e


# ----------------------------- Pallas kernel ------------------------------ #
def _make_suffstats_kernel(m_total, tile_m, tiles_per_split, needs_mask):
    """Kernel factory: one M-tile of the 1x1 conv (bf16 MXU matmul, f32 acc)
    plus per-channel sufficient statistics accumulated into ONE resident
    (8, Ct) block (rows: Σy, Σy², Σt, Σt², Σyt, 3 zero-pad rows)."""

    def kernel(s_ref, t_ref, w_ref, stat_ref):
        @pl.when(pl.program_id(1) == 0)
        def _init():
            stat_ref[...] = jnp.zeros_like(stat_ref)

        s = s_ref[...]                              # (tile_m, Cs) bf16
        t = t_ref[...].astype(jnp.float32)          # (tile_m, Ct) f32

        if needs_mask:
            # Tail mask: zero out rows past the real M (last tile only is
            # partially out-of-bounds; OOB reads are unspecified, so mask).
            row0 = (pl.program_id(0) * tiles_per_split + pl.program_id(1)) * tile_m
            rows = lax.broadcasted_iota(jnp.int32, (tile_m, 1), 0) + row0
            valid = rows < m_total
            s = jnp.where(valid, s, jnp.zeros_like(s))
            t = jnp.where(valid, t, jnp.zeros_like(t))

        # 1x1 conv == matmul: (tile_m, Cs) @ (Cs, Ct) -> (tile_m, Ct), f32 acc.
        y = jnp.dot(s, w_ref[...], preferred_element_type=jnp.float32)

        sy = jnp.sum(y, axis=0, keepdims=True)
        sy2 = jnp.sum(y * y, axis=0, keepdims=True)
        st = jnp.sum(t, axis=0, keepdims=True)
        st2 = jnp.sum(t * t, axis=0, keepdims=True)
        syt = jnp.sum(y * t, axis=0, keepdims=True)
        pad = jnp.zeros((3, y.shape[1]), jnp.float32)
        stat_ref[...] += jnp.concatenate([sy, sy2, st, st2, syt, pad], axis=0)

    return kernel


def connector_distill_loss(s_flat, t_flat, conv_w_oi, gamma, beta):
    """Connector (1x1 conv + training-mode BatchNorm) applied to the student
    feature, then sum-of-squared-error against the (detached) teacher feature.

    s_flat : (M, Cs)  channels-last, spatially flattened student feature (bf16)
    t_flat : (M, Ct)  channels-last, spatially flattened teacher feature (bf16)
    conv_w_oi : (Ct, Cs) 1x1 conv weight;  gamma/beta : (Ct,) BN affine params
    """
    M, Cs = s_flat.shape
    Ct = conv_w_oi.shape[0]

    # Producers should already emit bf16; these casts are no-ops in that case.
    if s_flat.dtype != jnp.bfloat16:
        s_flat = s_flat.astype(jnp.bfloat16)
    if t_flat.dtype != jnp.bfloat16:
        t_flat = t_flat.astype(jnp.bfloat16)
    # Weight is tiny: transpose + cast once, stays resident in VMEM.
    w_io = jnp.transpose(conv_w_oi, (1, 0)).astype(jnp.bfloat16)   # (Cs, Ct)

    # --- tile / grid selection (no M padding, no channel padding) ---
    if M <= 16:
        tile_m = M                                     # full-extent block
    else:
        tile_m = max(16, min(DEFAULT_TILE_M, (M // 16) * 16))
    total_tiles = pl.cdiv(M, tile_m)
    # Split axis only when it does not create empty tiles and there is enough
    # work per split (on 1-TC chips it is a pure serial loop anyway).
    if total_tiles >= 4 and total_tiles % NUM_SPLITS == 0:
        num_splits = NUM_SPLITS
    else:
        num_splits = 1
    tiles_per_split = total_tiles // num_splits
    needs_mask = (total_tiles * tile_m != M)

    stat_shape = jax.ShapeDtypeStruct((num_splits, 8, Ct), jnp.float32)
    # Squeezed split axis -> kernel sees a sublane/lane-dense (8, Ct) block that
    # is revisited (resident accumulator) across the "arbitrary" reduction axis.
    stat_spec = pl.BlockSpec((None, 8, Ct), lambda p, i: (p, 0, 0))

    grid_spec = pltpu.PrefetchScalarGridSpec(
        num_scalar_prefetch=0,
        grid=(num_splits, tiles_per_split),
        in_specs=[
            pl.BlockSpec((tile_m, Cs),
                         lambda p, i: (p * tiles_per_split + i, 0)),
            pl.BlockSpec((tile_m, Ct),
                         lambda p, i: (p * tiles_per_split + i, 0)),
            # 1x1-conv weight: constant index map -> fetched once, stays resident.
            # (If VMEM gets tight on v7x, add pipeline_mode=pl.Buffered(1) here.)
            pl.BlockSpec((Cs, Ct), lambda p, i: (0, 0)),
        ],
        out_specs=stat_spec,
    )

    cost = pl.CostEstimate(
        flops=2 * total_tiles * tile_m * Cs * Ct,
        transcendentals=0,
        bytes_accessed=(M * (Cs + Ct) * 2            # bf16 feature streams
                        + Cs * Ct * 2                # resident weight
                        + num_splits * 8 * Ct * 4),  # packed stats writeback
    )

    stats = pl.pallas_call(
        _make_suffstats_kernel(M, tile_m, tiles_per_split, needs_mask),
        grid_spec=grid_spec,
        out_shape=stat_shape,
        compiler_params=pltpu.CompilerParams(
            dimension_semantics=("parallel", "arbitrary"),
            vmem_limit_bytes=VMEM_LIMIT_BYTES,
        ),
        cost_estimate=cost,
    )(s_flat, t_flat, w_io)

    # Tiny O(Ct) epilogue: combine per-split partial statistics and expand
    #   sum_m (a*y + b - t)^2 = a²Σy² + 2abΣy + M b² - 2aΣyt - 2bΣt + Σt²,
    #   a = γ·rsqrt(var+eps), b = β - a·mean   (biased batch variance, as PyTorch).
    S = jnp.sum(stats, axis=0)                      # (8, Ct)
    Sy, Sy2, St, St2, Syt = S[0], S[1], S[2], S[3], S[4]
    m = jnp.float32(M)
    mean = Sy / m
    var = jnp.maximum(Sy2 / m - mean * mean, 0.0)   # biased (training-mode) variance
    a = gamma.astype(jnp.float32) * lax.rsqrt(var + BN_EPS)
    b = beta.astype(jnp.float32) - a * mean
    loss_c = (a * a * Sy2 + 2.0 * a * b * Sy + m * b * b
              - 2.0 * a * Syt - 2.0 * b * St + St2)
    return jnp.sum(loss_c)


# -------------------- stub teacher / student networks --------------------- #
# TODO(synk): t_net / s_net are external modules passed to __init__ in the
# original; deterministic stand-in extractors (1x1 conv -> ReLU feature,
# GAP -> linear head) are used here.  Features are emitted as bf16 NHWC so the
# distiller kernel streams them straight from HBM (no cast / transpose pass).
def extract_feature_cnn(x_nchw, params):
    conv_w, fc_w = params                        # conv_w: (C_out, Cin), fc_w: (C_out, n_cls)
    feat = jnp.einsum("nchw,oc->nhwo", x_nchw, conv_w)   # NHWC feature
    feat = jax.nn.relu(feat).astype(jnp.bfloat16)        # bf16 producer output
    pooled = jnp.mean(feat.astype(jnp.float32), axis=(1, 2))
    out = pooled @ fc_w
    return [feat], out


# ----------------------------- Cnn_Distiller ------------------------------ #
def cnn_distiller_forward(x, t_params, s_params, connector_params):
    t_feats, _t_out = extract_feature_cnn(x, t_params)
    s_feats, s_out = extract_feature_cnn(x, s_params)
    feat_num = len(t_feats)
    loss_distill = jnp.float32(0.0)
    for i in range(feat_num):
        conv_w, gamma, beta = connector_params[i]
        sf = s_feats[i]
        tf = lax.stop_gradient(t_feats[i])       # .detach()
        N, H, W, Cs = sf.shape
        Ct = tf.shape[-1]
        loss_i = connector_distill_loss(
            sf.reshape(N * H * W, Cs), tf.reshape(N * H * W, Ct),
            conv_w, gamma, beta)
        loss_distill = loss_distill + loss_i / 2 ** (feat_num - i - 1)
    return s_out, loss_distill


# --------------------------- pure-JAX reference ---------------------------- #
def _reference_loss(s_feat_nhwc, t_feat_nhwc, conv_w, gamma, beta):
    s = s_feat_nhwc.astype(jnp.float32)
    t = t_feat_nhwc.astype(jnp.float32)
    y = jnp.einsum("nhwc,oc->nhwo", s, conv_w)          # 1x1 conv
    mean = jnp.mean(y, axis=(0, 1, 2), keepdims=True)
    var = jnp.mean((y - mean) ** 2, axis=(0, 1, 2), keepdims=True)
    z = ((y - mean) / jnp.sqrt(var + BN_EPS) * gamma.reshape(1, 1, 1, -1)
         + beta.reshape(1, 1, 1, -1))
    return jnp.sum((z - t) ** 2)


if __name__ == "__main__":
    key = jax.random.PRNGKey(0)
    k_x, k_tc, k_tf, k_sc, k_sf, k_cw = jax.random.split(key, 6)

    # 'vgg' -> t_channels = s_channels = [512]; small batch / spatial for the demo.
    # H = W = 5 gives M = 50 (not a multiple of 16) so the in-kernel tail mask
    # path is exercised.
    N, Cin, H, W = 2, 3, 5, 5
    C_T = C_S = 512
    NUM_CLASSES = 10

    x = jax.random.normal(k_x, (N, Cin, H, W), dtype=jnp.float32)

    # Stub teacher / student params (deterministic).
    t_params = (
        jax.random.normal(k_tc, (C_T, Cin), dtype=jnp.float32) * math.sqrt(2.0 / Cin),
        jax.random.normal(k_tf, (C_T, NUM_CLASSES), dtype=jnp.float32) * 0.05,
    )
    s_params = (
        jax.random.normal(k_sc, (C_S, Cin), dtype=jnp.float32) * math.sqrt(2.0 / Cin),
        jax.random.normal(k_sf, (C_S, NUM_CLASSES), dtype=jnp.float32) * 0.05,
    )

    # Connector params, initialized exactly as build_feature_connector does:
    #   conv weight ~ N(0, sqrt(2/n)), n = kH*kW*out_ch = 1*1*512; BN gamma=1, beta=0.
    conv_w = jax.random.normal(k_cw, (C_T, C_S), dtype=jnp.float32) * math.sqrt(2.0 / C_T)
    gamma = jnp.ones((C_T,), dtype=jnp.float32)
    beta = jnp.zeros((C_T,), dtype=jnp.float32)
    connector_params = [(conv_w, gamma, beta)]

    s_out, loss_distill = cnn_distiller_forward(x, t_params, s_params, connector_params)
    s_out = jax.block_until_ready(s_out)
    loss_distill = jax.block_until_ready(loss_distill)

    # Sanity check against a pure-JAX f32 reference on the same bf16 features
    # (remaining error is the bf16 MXU path inside the kernel).
    t_feats, _ = extract_feature_cnn(x, t_params)
    s_feats, _ = extract_feature_cnn(x, s_params)
    ref = _reference_loss(s_feats[0], t_feats[0], conv_w, gamma, beta)
    assert jnp.isfinite(loss_distill)
    assert jnp.allclose(loss_distill, ref, rtol=5e-2), (loss_distill, ref)

    print("KERNEL_OK")
</pallas_src>

<mosaic_0001>
module attributes {stable_mosaic.version = 11 : i64} {
  func.func @kernel(%arg0: i32, %arg1: i32, %arg2: memref<48x512xbf16, #tpu.memory_space<vmem>>, %arg3: memref<48x512xbf16, #tpu.memory_space<vmem>>, %arg4: memref<512x512xbf16, #tpu.memory_space<vmem>>, %arg5: memref<1x8x512xf32, #tpu.memory_space<vmem>>) attributes {dimension_semantics = [#tpu.dimension_semantics<parallel>, #tpu.dimension_semantics<arbitrary>], iteration_bounds = array<i64: 1, 2>, scalar_prefetch = 0 : i64, scratch_operands = 0 : i64, tpu.core_type = #tpu.core_type<tc>, window_params = [{transform_indices = @transform_0, window_bounds = array<i64: 48, 512>}, {transform_indices = @transform_1, window_bounds = array<i64: 48, 512>}, {pipeline_mode = #tpu.pipeline_mode<synchronous>, transform_indices = @transform_2, window_bounds = array<i64: 512, 512>}, {transform_indices = @transform_3, window_bounds = array<i64: 1, 8, 512>}]} {
    %c0_i32 = arith.constant 0 : i32
    %0 = arith.cmpi eq, %arg1, %c0_i32 : i32
    %1 = arith.extui %0 : i1 to i32
    %c0_i32_0 = arith.constant 0 : i32
    %2 = arith.cmpi ne, %1, %c0_i32_0 : i32
    scf.if %2 {
      %cst_20 = arith.constant 0.000000e+00 : f32
      %45 = vector.broadcast %cst_20 : f32 to vector<8x512xf32>
      %c0_21 = arith.constant 0 : index
      %c0_22 = arith.constant 0 : index
      %c0_23 = arith.constant 0 : index
      %46 = vector.load %arg5[%c0_21, %c0_22, %c0_23] : memref<1x8x512xf32, #tpu.memory_space<vmem>>, vector<1x8x512xf32>
      %47 = vector.shape_cast %46 : vector<1x8x512xf32> to vector<8x512xf32>
      %48 = vector.shape_cast %45 : vector<8x512xf32> to vector<1x8x512xf32>
      tpu.vector_store %arg5[%c0_21, %c0_22, %c0_23], %48 {strides = array<i32>} : memref<1x8x512xf32, #tpu.memory_space<vmem>>, vector<1x8x512xf32>,
    } else {
    }
    %c0 = arith.constant 0 : index
    %c0_1 = arith.constant 0 : index
    %3 = vector.load %arg2[%c0, %c0_1] : memref<48x512xbf16, #tpu.memory_space<vmem>>, vector<48x512xbf16>
    %c0_2 = arith.constant 0 : index
    %c0_3 = arith.constant 0 : index
    %4 = vector.load %arg3[%c0_2, %c0_3] : memref<48x512xbf16, #tpu.memory_space<vmem>>, vector<48x512xbf16>
    %5 = arith.extf %4 : vector<48x512xbf16> to vector<48x512xf32>
    %c2_i32 = arith.constant 2 : i32
    %6 = arith.muli %arg0, %c2_i32 : i32
    %7 = arith.addi %6, %arg1 : i32
    %c48_i32 = arith.constant 48 : i32
    %8 = arith.muli %7, %c48_i32 : i32
    %9 = tpu.iota {dimensions = array<i32: 0>} : vector<48x1xi32>
    %10 = vector.broadcast %8 : i32 to vector<48x1xi32>
    %11 = arith.addi %9, %10 : vector<48x1xi32>
    %c50_i32 = arith.constant 50 : i32
    %12 = vector.broadcast %c50_i32 : i32 to vector<48x1xi32>
    %13 = arith.cmpi slt, %11, %12 : vector<48x1xi32>
    %cst = arith.constant 0.000000e+00 : bf16
    %14 = vector.broadcast %cst : bf16 to vector<48x512xbf16>
    %15 = vector.shape_cast %13 : vector<48x1xi1> to vector<48x1xi1>
    %16 = vector.broadcast %15 : vector<48x1xi1> to vector<48x512xi1>
    %17 = arith.select %16, %3, %14 : vector<48x512xi1>, vector<48x512xbf16>
    %cst_4 = arith.constant 0.000000e+00 : f32
    %18 = vector.broadcast %cst_4 : f32 to vector<48x512xf32>
    %19 = vector.shape_cast %13 : vector<48x1xi1> to vector<48x1xi1>
    %20 = vector.broadcast %19 : vector<48x1xi1> to vector<48x512xi1>
    %21 = arith.select %20, %5, %18 : vector<48x512xi1>, vector<48x512xf32>
    %c0_5 = arith.constant 0 : index
    %c0_6 = arith.constant 0 : index
    %22 = vector.load %arg4[%c0_5, %c0_6] : memref<512x512xbf16, #tpu.memory_space<vmem>>, vector<512x512xbf16>
    %cst_7 = arith.constant dense<0.000000e+00> : vector<48x512xf32>
    %23 = tpu.matmul %17, %22, %cst_7 {dimension_numbers = #tpu.dot_dimension_numbers<[1], [0], [0], [1], [0, 0, 1, 1], [], []>} : vector<48x512xbf16>, vector<512x512xbf16>, vector<48x512xf32> -> vector<48x512xf32>
    %cst_8 = arith.constant dense<0.000000e+00> : vector<512xf32>
    %24 = vector.multi_reduction <add>, %23, %cst_8 [0] : vector<48x512xf32> to vector<512xf32>
    %25 = vector.shape_cast %24 : vector<512xf32> to vector<1x512xf32>
    %26 = arith.mulf %23, %23 : vector<48x512xf32>
    %cst_9 = arith.constant dense<0.000000e+00> : vector<512xf32>
    %27 = vector.multi_reduction <add>, %26, %cst_9 [0] : vector<48x512xf32> to vector<512xf32>
    %28 = vector.shape_cast %27 : vector<512xf32> to vector<1x512xf32>
    %cst_10 = arith.constant dense<0.000000e+00> : vector<512xf32>
    %29 = vector.multi_reduction <add>, %21, %cst_10 [0] : vector<48x512xf32> to vector<512xf32>
    %30 = vector.shape_cast %29 : vector<512xf32> to vector<1x512xf32>
    %31 = arith.mulf %21, %21 : vector<48x512xf32>
    %cst_11 = arith.constant dense<0.000000e+00> : vector<512xf32>
    %32 = vector.multi_reduction <add>, %31, %cst_11 [0] : vector<48x512xf32> to vector<512xf32>
    %33 = vector.shape_cast %32 : vector<512xf32> to vector<1x512xf32>
    %34 = arith.mulf %23, %21 : vector<48x512xf32>
    %cst_12 = arith.constant dense<0.000000e+00> : vector<512xf32>
    %35 = vector.multi_reduction <add>, %34, %cst_12 [0] : vector<48x512xf32> to vector<512xf32>
    %36 = vector.shape_cast %35 : vector<512xf32> to vector<1x512xf32>
    %cst_13 = arith.constant 0.000000e+00 : f32
    %37 = vector.broadcast %cst_13 : f32 to vector<3x512xf32>
    %c0_14 = arith.constant 0 : index
    %c0_15 = arith.constant 0 : index
    %c0_16 = arith.constant 0 : index
    %38 = vector.load %arg5[%c0_14, %c0_15, %c0_16] : memref<1x8x512xf32, #tpu.memory_space<vmem>>, vector<1x8x512xf32>
    %39 = vector.shape_cast %38 : vector<1x8x512xf32> to vector<8x512xf32>
    %40 = tpu.concatenate %25, %28, %30, %33, %36, %37 in 0 : vector<1x512xf32>, vector<1x512xf32>, vector<1x512xf32>, vector<1x512xf32>, vector<1x512xf32>, vector<3x512xf32> -> vector<8x512xf32>
    %41 = arith.addf %39, %40 : vector<8x512xf32>
    %c0_17 = arith.constant 0 : index
    %c0_18 = arith.constant 0 : index
    %c0_19 = arith.constant 0 : index
    %42 = vector.load %arg5[%c0_17, %c0_18, %c0_19] : memref<1x8x512xf32, #tpu.memory_space<vmem>>, vector<1x8x512xf32>
    %43 = vector.shape_cast %42 : vector<1x8x512xf32> to vector<8x512xf32>
    %44 = vector.shape_cast %41 : vector<8x512xf32> to vector<1x8x512xf32>
    tpu.vector_store %arg5[%c0_17, %c0_18, %c0_19], %44 {strides = array<i32>} : memref<1x8x512xf32, #tpu.memory_space<vmem>>, vector<1x8x512xf32>,
    return
  }
  func.func @transform_0(%arg0: i32, %arg1: i32) -> (i32, i32) {
    %c2_i32 = arith.constant 2 : i32
    %0 = arith.muli %arg0, %c2_i32 : i32
    %1 = arith.addi %0, %arg1 : i32
    %c0_i32 = arith.constant 0 : i32
    %c0_i32_0 = arith.constant 0 : i32
    return %1, %c0_i32 : i32, i32
  }
  func.func @transform_1(%arg0: i32, %arg1: i32) -> (i32, i32) {
    %c2_i32 = arith.constant 2 : i32
    %0 = arith.muli %arg0, %c2_i32 : i32
    %1 = arith.addi %0, %arg1 : i32
    %c0_i32 = arith.constant 0 : i32
    %c0_i32_0 = arith.constant 0 : i32
    return %1, %c0_i32 : i32, i32
  }
  func.func @transform_2(%arg0: i32, %arg1: i32) -> (i32, i32) {
    %c0_i32 = arith.constant 0 : i32
    %c0_i32_0 = arith.constant 0 : i32
    %c0_i32_1 = arith.constant 0 : i32
    return %c0_i32, %c0_i32_0 : i32, i32
  }
  func.func @transform_3(%arg0: i32, %arg1: i32) -> (i32, i32, i32) {
    %c0_i32 = arith.constant 0 : i32
    %c0_i32_0 = arith.constant 0 : i32
    %c0_i32_1 = arith.constant 0 : i32
    return %arg0, %c0_i32, %c0_i32_0 : i32, i32, i32
  }
}

</mosaic_0001>

<bundles_post_ra>
// kernel: tpu_custom_call.1
= control target key start
LH: loop header
LB: loop body
LE: loop exit
PB: predicated region body
PF: predicated region fallthrough
CT: control target
= control target key end

     0   :  { %8 = vsyncpa [#allocation3], 0  ;;  %s3274_s0 = inlined_call_operand.hbm [shape: bf16[50,512], index: 0, kind: input, shape index: {}]   ;;  %s3275_s1 = inlined_call_operand.hbm [shape: bf16[50,512], index: 1, kind: input, shape index: {}]   ;;  %s3276_s2 = inlined_call_operand.hbm [shape: bf16[512,512], index: 2, kind: input, shape index: {}]   ;;  %s3277_s3 = inlined_call_operand.hbm [shape: f32[1,8,512], index: 3, kind: output, shape index: {}]  }
   0x1   :  { %10 = vsyncpa [#allocation3 + $0x1], 0 }
   0x2   :  { %11 = vsyncpa [#allocation6], 0 }
   0x3   :  { %13 = vsyncpa [#allocation6 + $0x1], 0 }
   0x4   :  { %14 = vsyncpa [#allocation4], 0  ;;  %s2614_s12 = smov 0   ;;  %s2616_s13 = smov 0  }
   0x5   :  { %s2618_s14 = smov 0   ;;  %s2620_s15 = smov 0  }
   0x6   :  { %s2622_s16 = smov 0   ;;  %s2624_s17 = smov 0  }
   0x7 LB: > { %s2643_s18 = sadd.s32 4294967295, %s2581_s17   ;;  %s29_s19 = sadd.s32 1, %s2577_s16  ;;  %s2581_s17 = sphi %s2624_s17, %s20_s17   ;;  %s2577_s16 = sphi %s2622_s16, %s3307_s16   ;;  %s2573_s15 = sphi %s2620_s15, %s3306_s15   ;;  %s2569_s14 = sphi %s2618_s14, %s3305_s14   ;;  %s2565_s13 = sphi %s2616_s13, %s3304_s13   ;;  %s2561_s12 = sphi %s2614_s12, %s3303_s12  }
   0x8   : > { %p30_p0 = scmp.ge.s32.totalorder %s29_s19, 2  ;;  %s43_s20 = sadd.s32 1, %s2569_s14 }
   0x9   : > { %p50_p1 = scmp.ne.s32.totalorder %s2569_s14, %s2565_s13  ;;  %p51_p2 = scmp.eq.s32.totalorder %s2581_s17, 0 }
   0xa   : > { %s3309_s19 = smov (%p30_p0, %s29_s19), 0  ;;  %p56_p4 = scmp.ne.s32.totalorder %s2565_s13, %s2561_s12 }
   0xb   : > { %p2652_p3 = por %p51_p2, %p50_p1  ;;  %s40_s22 = ssub.s32 %s2577_s16, %s3309_s19 }
   0xc   : > { %p3278_p5 = scmp.eq.s32.totalorder %s2643_s18, 0  ;;  %p41_p6 = scmp.eq.s32.totalorder %s40_s22, 0 }
   0xd   : > { %s3281_s21 = scalar_select %p2652_p3, 1, 0 }
   0xe   : > { %p1943_p7 = scmp.ge.s32.totalorder %s2581_s17, 1  ;;  %p2663_p8 = por %p3278_p5, %p56_p4 }
   0xf   : > { %p144_p9 = scmp.lt.s32.totalorder %s2581_s17, 3  ;;  %s2583_s26 = smov [#allocation7]  }
  0x10   : > { %s3282_s23 = scalar_select %p2663_p8, 1, 0 }
  0x11   : > { %s2669_s24 = scalar_select %p41_p6, %s2569_s14, %s43_s20  }
  0x12   : > { %p2671_p10 = pnand %p1943_p7, %p144_p9  ;;  %s156_s27 = sshll.u32 %s2583_s26, 4  ;;  %s157_s27 = int_to_ptr.vmem [resolvable:$true] %s156_s27 }
  0x13   : > { %s2409_s4 = scalar_lea.hbm %s3276_s2, 16384 }
  0x14   : > { %s3283_s25 = scalar_select %p2671_p10, 1, 0 }
  0x15   : > { %p2152_p11 = pneg %p2671_p10  ;;  %p2410_p13 = scmp.ne.s32.totalorder %s3276_s2, %s2409_s4 }
  0x16   : > { %p2416_p4 = scmp.lt.u32.totalorder %s2409_s4, %s3276_s2 }
  0x17   : > { %p2679_p12 = pnand %p2152_p11, %p3278_p5 }
  0x19   : > { %p2411_p0 = pneg %p2679_p12 }
  0x1b   : > { %p2412_p1 = pnand %p2411_p0, %p2410_p13 }
  0x1d   : > { %p2413_p2 = pneg %p2412_p1 }
  0x1f   : > { %p2418_p6 = pnand %p2416_p4, %p2413_p2 }
  0x21   : > { %2421 = shalt.err (!%p2418_p6)
}
  0x22   : > { %s2422_s9 = scalar_lea.vmem %s157_s27, 16384  ;;  %p2430_p5 = scmp.lt.s32.totalorder %s157_s27, %s157_s27 }
  0x23   : > { %p2423_p7 = scmp.ne.s32.totalorder %s157_s27, %s2422_s9  ;;  %p2431_p8 = scmp.lt.s32.totalorder %s2422_s9, %s2422_s9 }
  0x25   : > { %p2425_p9 = pnand %p2423_p7, %p2411_p0  ;;  %p2432_p10 = por %p2431_p8, %p2430_p5 }
  0x27   : > { %p2426_p11 = pneg %p2425_p9 }
  0x29   : > { %p2433_p3 = pnand %p2432_p10, %p2426_p11 }
  0x2b   : > { %2436 = shalt.err (!%p2433_p3)
}
  0x2c   : > { %s2584_s10 = smov 256   ;;  %s2585_s11 = smov 16  }
  0x2d   : > { %2155 = dma.hbm_to_vmem [thread:$0]  (!%p2679_p12), %s3276_s2, 16384, %s157_s27, [#allocation6], %s2584_s10, %s2584_s10, %s2585_s11  }
  0x2e   : > { %p1945_p13 = scmp.ge.s32.totalorder %s2581_s17, 2 }
  0x2f   : > { %p3285_p1 = scmp.ne.s32.totalorder (!%p1945_p13), %s3281_s21, 0 }
  0x30   : > { %166 = sbr.rel (%p1945_p13) target bundleno = 127 (0x7f), region = 20 }
  0x37   : > { %169 = sbr.rel (!%p3285_p1) target bundleno = 90 (0x5a), region = 24  ;;  %s170_s22 = sand.u32 (%p3285_p1), 1, %s2569_s14  }
  0x38   : > { %s177_s26 = smul.u32 (%p3285_p1), 6, %s2577_s16  ;;  %s2707_s5 = scalar_lea.sflag (%p3285_p1), [#allocation3], %s170_s22 }
  0x39   : > { %s2139_s29 = smul.u32 (%p3285_p1), 96, %s170_s22 }
  0x3a   : > { %s178_s30 = ssub.s32 (%p3285_p1), 7, %s177_s26 }
  0x3b   : > { %p179_p3 = scmp.lt.s32.totalorder (%p3285_p1), %s178_s30, 6  ;;  %s174_s27 = scalar_lea.vmem (%p3285_p1), [#allocation2], %s2139_s29 }
  0x3e   : > { %s3311_s30 = smov (!%p179_p3, %s178_s30), 6 }
  0x3f   : > { %s2704_s4 = sshll.u32 %s3311_s30, 8 }
  0x40   : > { %s184_s28 = ssub.s32 1536, %s2704_s4 }
  0x41   : > { %185 = vsyncadd %s2707_s5, %s184_s28  ;;  %p1948_p5 = scmp.ne.s32.totalorder %s2704_s4, 0  ;;  %s2113_s6 = smul.u32 1536, %s2577_s16 }
  0x42   : > { %s191_s7 = sshll.u32 %s174_s27, 4  ;;  %s2441_s22 = scalar_lea.hbm %s3274_s0, 1792  ;;  %s2717_s7 = int_to_ptr.vmem [resolvable:$true] %s191_s7 }
  0x43   : > { %s2715_s10 = scalar_lea.hbm %s3274_s0, %s2113_s6 }
  0x44   : > { %s2437_s11 = scalar_lea.hbm %s2715_s10, %s2704_s4  ;;  %p2442_p0 = scmp.lt.u32.totalorder %s2715_s10, %s3274_s0 }
  0x45   : > { %p2438_p8 = scmp.ne.s32.totalorder %s2715_s10, %s2437_s11  ;;  %p2443_p2 = scmp.lt.u32.totalorder %s2441_s22, %s2437_s11 }
  0x46   : > { %p2445_p6 = scmp.lt.u32.totalorder %s2437_s11, %s2715_s10 }
  0x47   : > { %p2439_p10 = pnand %p2438_p8, %p1948_p5  ;;  %p2444_p4 = por %p2443_p2, %p2442_p0 }
  0x49   : > { %p2440_p12 = pneg %p2439_p10  ;;  %p2446_p7 = por %p2445_p6, %p2444_p4 }
  0x4b   : > { %p2447_p9 = pnand %p2446_p7, %p2440_p12 }
  0x4d   : > { %2450 = shalt.err (!%p2447_p9)
}
  0x4e   : > { %s2451_s30 = scalar_lea.vmem %s2717_s7, %s2704_s4  ;;  %s2586_s28 = smov [#allocation2]  }
  0x4f   : > { %p2452_p11 = scmp.ne.s32.totalorder %s2717_s7, %s2451_s30  ;;  %s2455_s27 = sshll.u32 %s2586_s28, 4  ;;  %s2456_s27 = int_to_ptr.vmem [resolvable:$false] %s2455_s27 }
  0x50   : > { %s2457_s6 = scalar_lea.vmem %s2456_s27, 3072  ;;  %p2458_p3 = scmp.lt.s32.totalorder %s2717_s7, %s2456_s27 }
  0x51   : > { %p2453_p13 = pnand %p2452_p11, %p1948_p5  ;;  %p2459_p8 = scmp.lt.s32.totalorder %s2457_s6, %s2451_s30 }
  0x53   : > { %p2454_p1 = pneg %p2453_p13  ;;  %p2460_p10 = por %p2459_p8, %p2458_p3 }
  0x55   : > { %p2461_p0 = pnand %p2460_p10, %p2454_p1 }
  0x57   : > { %2464 = shalt.err (!%p2461_p0)
}
  0x58   : > { %s2587_s8 = smov 256   ;;  %s2588_s9 = smov 16  }
  0x59   : > { %197 = dma.hbm_to_vmem [thread:$0]  (%p1948_p5), %s2715_s10, %s2704_s4, %s2717_s7, %s2707_s5, %s2587_s8, %s2587_s8, %s2588_s9  }
  0x5a PF: > { %p3286_p12 = scmp.ne.s32.totalorder %s3281_s21, 0 }
  0x5b   : > { %s201_s11 = sand.u32 (%p3286_p12), 1, %s2581_s17   ;;  %s203_s12 = sand.u32 (%p3286_p12), 1, %s2569_s14  }
  0x5c   : > { %200 = sbr.rel (!%p3286_p12) target bundleno = 127 (0x7f), region = 28  ;;  %s2752_s28 = scalar_lea.sflag (%p3286_p12), [#allocation6], %s201_s11 }
  0x5d   : > { %s2140_s20 = smul.u32 (%p3286_p12), 96, %s203_s12 }
  0x5e   : > { %s208_s22 = smul.u32 (%p3286_p12), 6, %s2577_s16 }
  0x5f   : > { %s205_s4 = scalar_lea.vmem (%p3286_p12), [#allocation5], %s2140_s20 }
  0x60   : > { %s209_s26 = ssub.s32 (%p3286_p12), 7, %s208_s22 }
  0x61   : > { %p210_p2 = scmp.lt.s32.totalorder (%p3286_p12), %s209_s26, 6 }
  0x63   : > { %s3313_s26 = smov (!%p210_p2, %s209_s26), 6 }
  0x64   : > { %s2749_s29 = sshll.u32 %s3313_s26, 8 }
  0x65   : > { %s215_s30 = ssub.s32 1536, %s2749_s29 }
  0x66   : > { %216 = vsyncadd %s2752_s28, %s215_s30  ;;  %p1955_p5 = scmp.ne.s32.totalorder %s2749_s29, 0  ;;  %s2114_s21 = smul.u32 1536, %s2577_s16 }
  0x67   : > { %s222_s5 = sshll.u32 %s205_s4, 4  ;;  %s2469_s11 = scalar_lea.hbm %s3275_s1, 1792  ;;  %s2762_s5 = int_to_ptr.vmem [resolvable:$true] %s222_s5 }
  0x68   : > { %s2760_s27 = scalar_lea.hbm %s3275_s1, %s2114_s21 }
  0x69   : > { %s2465_s6 = scalar_lea.hbm %s2760_s27, %s2749_s29  ;;  %p2470_p9 = scmp.lt.u32.totalorder %s2760_s27, %s3275_s1 }
  0x6a   : > { %p2466_p4 = scmp.ne.s32.totalorder %s2760_s27, %s2465_s6  ;;  %p2471_p11 = scmp.lt.u32.totalorder %s2469_s11, %s2465_s6 }
  0x6b   : > { %p2473_p1 = scmp.lt.u32.totalorder %s2465_s6, %s2760_s27 }
  0x6c   : > { %p2467_p6 = pnand %p2466_p4, %p1955_p5  ;;  %p2472_p13 = por %p2471_p11, %p2470_p9 }
  0x6e   : > { %p2468_p7 = pneg %p2467_p6  ;;  %p2474_p3 = por %p2473_p1, %p2472_p13 }
  0x70   : > { %p2475_p8 = pnand %p2474_p3, %p2468_p7 }
  0x72   : > { %2478 = shalt.err (!%p2475_p8)
}
  0x73   : > { %s2479_s22 = scalar_lea.vmem %s2762_s5, %s2749_s29  ;;  %s2589_s26 = smov [#allocation5]  }
  0x74   : > { %p2480_p10 = scmp.ne.s32.totalorder %s2762_s5, %s2479_s22  ;;  %s2483_s30 = sshll.u32 %s2589_s26, 4  ;;  %s2484_s30 = int_to_ptr.vmem [resolvable:$false] %s2483_s30 }
  0x75   : > { %s2485_s4 = scalar_lea.vmem %s2484_s30, 3072  ;;  %p2486_p2 = scmp.lt.s32.totalorder %s2762_s5, %s2484_s30 }
  0x76   : > { %p2481_p0 = pnand %p2480_p10, %p1955_p5  ;;  %p2487_p4 = scmp.lt.s32.totalorder %s2485_s4, %s2479_s22 }
  0x78   : > { %p2482_p12 = pneg %p2481_p0  ;;  %p2488_p6 = por %p2487_p4, %p2486_p2 }
  0x7a   : > { %p2489_p9 = pnand %p2488_p6, %p2482_p12 }
  0x7c   : > { %2492 = shalt.err (!%p2489_p9)
}
  0x7d   : > { %s2590_s21 = smov 256   ;;  %s2591_s7 = smov 16  }
  0x7e   : > { %228 = dma.hbm_to_vmem [thread:$0]  (%p1955_p5), %s2760_s27, %s2749_s29, %s2762_s5, %s2752_s28, %s2590_s21, %s2590_s21, %s2591_s7  }
  0x7f PF: > { %p3287_p7 = scmp.ne.s32.totalorder %s3283_s25, 0 }
  0x80   : > { %s236_s10 = sand.u32 (!%p3287_p7), 1, %s2565_s13   ;;  %p3288_p11 = scmp.ne.s32.totalorder (!%p3287_p7), %s3282_s23, 0 }
  0x81   : > { %234 = sbr.rel (%p3287_p7) target bundleno = 570 (0x23a), region = 32  ;;  %s237_s8 = scalar_lea.sflag (!%p3287_p7), [#allocation3], %s236_s10 }
  0x82   : > { %s2141_s6 = smul.u32 (!%p3287_p7), 96, %s236_s10 }
  0x84   : > { %s2792_s9 = scalar_lea.vmem (!%p3287_p7), [#allocation2], %s2141_s6 }
  0x88   : > { %2544 = dma.done.wait (%p3288_p11), %s237_s8, 1536  }
  0x89   : > { %2546 = vsyncadd (%p3288_p11), %s237_s8, 4294965760  ;;  %s245_s29 = sand.u32 1, %s2643_s18   ;;  %s2799_s5 = scalar_lea.vmem [#allocation5], %s2141_s6 }
  0x8a   : > { %s246_s28 = scalar_lea.sflag [#allocation6], %s245_s29 }
  0x8b   : > { %2548 = dma.done.wait (%p3288_p11), %s246_s28, 1536  }
  0x8c   : > { %2550 = vsyncadd (%p3288_p11), %s246_s28, 4294965760  ;;  %p3289_p5 = scmp.eq.s32.totalorder %s2643_s18, 0 }
  0x8e   : > { %2552 = dma.done.wait (%p3289_p5), [#allocation6], 16384   ;;  %p3290_p13 = pmov %p3289_p5 }
  0x8f   : > { %p1962_p1 = scmp.ne.s32.totalorder %s2573_s15, 0 }
  0x90   : > { %2554 = vsyncadd (%p3290_p13), [#allocation6], 4294950912  ;;  %v2592_v0 = vmov (!%p1962_p1), 0.0  }
  0x91   : > { %296 = sbr.rel (%p1962_p1) target bundleno = 152 (0x98), region = 48  ;;  %297 = vst [vmem:[#allocation8] sm:$0xff] (!%p1962_p1), %v2592_v0  ;;  %298 = vst [vmem:[#allocation8 + $0x8] sm:$0xff] (!%p1962_p1), %v2592_v0 }
  0x92   : > { %299 = vst [vmem:[#allocation8 + $0x10] sm:$0xff] (!%p1962_p1), %v2592_v0  ;;  %300 = vst [vmem:[#allocation8 + $0x18] sm:$0xff] (!%p1962_p1), %v2592_v0 }
  0x98 PF: > { %v2217_v1 = vld [vmem:[#allocation7 + $0x4] ss:$16 sps:$4 sm:$0xff]   ;;  %v2219_v2 = vld [vmem:[#allocation7 + $0xc] ss:$16 sps:$4 sm:$0xff]   ;;  %v2221_v3 = vld [vmem:[#allocation7] ss:$16 sps:$4 sm:$0xff]   ;;  %v352_v31 = vlaneseq }
  0x99   : > { %1254 = vmatprep.subr.bf16.mxu0 %v2217_v1  ;;  %v2222_v4 = vld [vmem:[#allocation7 + $0x8] ss:$16 sps:$4 sm:$0xff]   ;;  %1380 = vmatprep.subr.bf16.mxu1 %v2219_v2  ;;  %v2223_v5 = vld [vmem:[#allocation7 + $0x24] ss:$16 sps:$4 sm:$0xff]   ;;  %v2225_v6 = vld [vmem:[#allocation7 + $0x2c] ss:$16 sps:$4 sm:$0xff]  }
  0x9a   : > { %1255 = vmatpush1.bf16.msra.mxu0 %v2221_v3  ;;  %1381 = vmatpush1.bf16.msra.mxu1 %v2222_v4  ;;  %v2227_v7 = vld [vmem:[#allocation7 + $0x20] ss:$16 sps:$4 sm:$0xff]   ;;  %v2228_v8 = vld [vmem:[#allocation7 + $0x28] ss:$16 sps:$4 sm:$0xff]   ;;  %v2229_v9 = vld [vmem:[#allocation7 + $0x44] ss:$16 sps:$4 sm:$0xff]  }
  0x9b   : > { %1256 = vmatprep.subr.bf16.mxu0 %v2223_v5  ;;  %1382 = vmatprep.subr.bf16.mxu1 %v2225_v6  ;;  %v2231_v10 = vld [vmem:[#allocation7 + $0x4c] ss:$16 sps:$4 sm:$0xff]   ;;  %v2233_v11 = vld [vmem:[#allocation7 + $0x40] ss:$16 sps:$4 sm:$0xff]   ;;  %v2234_v12 = vld [vmem:[#allocation7 + $0x48] ss:$16 sps:$4 sm:$0xff]  }
  0x9c   : > { %v2235_v13 = vld [vmem:[#allocation7 + $0x64] ss:$16 sps:$4 sm:$0xff]   ;;  %v2237_v14 = vld [vmem:[#allocation7 + $0x6c] ss:$16 sps:$4 sm:$0xff]   ;;  %v2239_v15 = vld [vmem:[#allocation7 + $0x60] ss:$16 sps:$4 sm:$0xff]  }
  0x9d   : > { %v2240_v16 = vld [vmem:[#allocation7 + $0x68] ss:$16 sps:$4 sm:$0xff]   ;;  %v2241_v17 = vld [vmem:[#allocation7 + $0x84] ss:$16 sps:$4 sm:$0xff]   ;;  %v2243_v18 = vld [vmem:[#allocation7 + $0x8c] ss:$16 sps:$4 sm:$0xff]  }
  0x9e   : > { %1257 = vmatpush1.bf16.msra.mxu0 %v2227_v7  ;;  %1383 = vmatpush1.bf16.msra.mxu1 %v2228_v8  ;;  %v2245_v19 = vld [vmem:[#allocation7 + $0x80] ss:$16 sps:$4 sm:$0xff]   ;;  %v2246_v20 = vld [vmem:[#allocation7 + $0x88] ss:$16 sps:$4 sm:$0xff]   ;;  %v2247_v21 = vld [vmem:[#allocation7 + $0xa4] ss:$16 sps:$4 sm:$0xff]  }
  0x9f   : > { %1258 = vmatprep.subr.bf16.mxu0 %v2229_v9  ;;  %1384 = vmatprep.subr.bf16.mxu1 %v2231_v10  ;;  %v2249_v22 = vld [vmem:[#allocation7 + $0xac] ss:$16 sps:$4 sm:$0xff]   ;;  %v2251_v23 = vld [vmem:[#allocation7 + $0xa0] ss:$16 sps:$4 sm:$0xff]   ;;  %v2252_v24 = vld [vmem:[#allocation7 + $0xa8] ss:$16 sps:$4 sm:$0xff]  }
  0xa0   : > { %v2253_v25 = vld [vmem:[#allocation7 + $0xc4] ss:$16 sps:$4 sm:$0xff]   ;;  %v2255_v26 = vld [vmem:[#allocation7 + $0xcc] ss:$16 sps:$4 sm:$0xff]   ;;  %v2257_v27 = vld [vmem:[#allocation7 + $0xc0] ss:$16 sps:$4 sm:$0xff]  }
  0xa1   : > { %v2258_v28 = vld [vmem:[#allocation7 + $0xc8] ss:$16 sps:$4 sm:$0xff]   ;;  %v2259_v29 = vld [vmem:[#allocation7 + $0xe4] ss:$16 sps:$4 sm:$0xff]   ;;  %v2261_v30 = vld [vmem:[#allocation7 + $0xec] ss:$16 sps:$4 sm:$0xff]  }
  0xa2   : > { %1259 = vmatpush1.bf16.msra.mxu0 %v2233_v11  ;;  %1385 = vmatpush1.bf16.msra.mxu1 %v2234_v12  ;;  %v2263_v32 = vld [vmem:[#allocation7 + $0xe0] ss:$16 sps:$4 sm:$0xff]   ;;  %v2264_v33 = vld [vmem:[#allocation7 + $0xe8] ss:$16 sps:$4 sm:$0xff]   ;;  %v2265_v34 = vld [vmem:[#allocation7 + $0x104] ss:$16 sps:$4 sm:$0xff]  }
  0xa3   : > { %1260 = vmatprep.subr.bf16.mxu0 %v2235_v13  ;;  %1386 = vmatprep.subr.bf16.mxu1 %v2237_v14  ;;  %v2267_v35 = vld [vmem:[#allocation7 + $0x10c] ss:$16 sps:$4 sm:$0xff]   ;;  %s351_s23 = smul.u32 48, %s2573_s15  ;;  %v2811_v36 = vshrl.u32 %v352_v31, 7  ;;  %v2269_v37 = vld [vmem:[#allocation7 + $0x100] ss:$16 sps:$4 sm:$0xff]  }
  0xa4   : > { %v2270_v38 = vld [vmem:[#allocation7 + $0x108] ss:$16 sps:$4 sm:$0xff]   ;;  %v2271_v39 = vld [vmem:[#allocation7 + $0x124] ss:$16 sps:$4 sm:$0xff]   ;;  %v2273_v40 = vld [vmem:[#allocation7 + $0x12c] ss:$16 sps:$4 sm:$0xff]  }
  0xa5   : > { %v354_v41 = vadd.s32 8, %v2811_v36  ;;  %v2814_v42 = vstv %s351_s23  ;;  %v2275_v43 = vld [vmem:[#allocation7 + $0x120] ss:$16 sps:$4 sm:$0xff]   ;;  %v2276_v44 = vld [vmem:[#allocation7 + $0x128] ss:$16 sps:$4 sm:$0xff]   ;;  %vm1802_vm12 = vcmask 1040384  }
  0xa6   : > { %1261 = vmatpush1.bf16.msra.mxu0 %v2239_v15  ;;  %1387 = vmatpush1.bf16.msra.mxu1 %v2240_v16  ;;  %v2277_v45 = vld [vmem:[#allocation7 + $0x144] ss:$16 sps:$4 sm:$0xff]   ;;  %v2279_v46 = vld [vmem:[#allocation7 + $0x14c] ss:$16 sps:$4 sm:$0xff]   ;;  %v2818_v47 = vadd.s32 %v2814_v42, %v2811_v36  ;;  %v2281_v49 = vld [vmem:[#allocation7 + $0x140] ss:$16 sps:$4 sm:$0xff]  }
  0xa7   : > { %1262 = vmatprep.subr.bf16.mxu0 %v2241_v17  ;;  %1388 = vmatprep.subr.bf16.mxu1 %v2243_v18  ;;  %v2821_v48 = vadd.s32 %v2814_v42, %v354_v41  ;;  %v2282_v50 = vld [vmem:[#allocation7 + $0x148] ss:$16 sps:$4 sm:$0xff]   ;;  %v2283_v51 = vld [vmem:[#allocation7 + $0x164] ss:$16 sps:$4 sm:$0xff]   ;;  %v2285_v52 = vld [vmem:[#allocation7 + $0x16c] ss:$16 sps:$4 sm:$0xff]  }
  0xa8   : > { %vm366_vm0 = vcmp.lt.s32.totalorder %v2818_v47, 50  ;;  %v301_v53 = vld [vmem:[%s2792_s9] sm:$0xff]  ;;  %v2288_v55 = vld [vmem:[#allocation7 + $0x168] ss:$16 sps:$4 sm:$0xff]   ;;  %v303_v56 = vld [vmem:[%s2792_s9 + $0x10] sm:$0xff]  ;;  %vm1807_vm13 = vcmask 1041408  }
  0xa9   : > { %vm367_vm1 = vcmp.lt.s32.totalorder %v2821_v48, 50  ;;  %v2287_v54 = vld [vmem:[#allocation7 + $0x160] ss:$16 sps:$4 sm:$0xff]   ;;  %vm2830_vm2 = vmpackc.low %vm366_vm0, %vm366_vm0  ;;  %v2289_v58 = vld [vmem:[#allocation7 + $0x184] ss:$16 sps:$4 sm:$0xff]   ;;  %vm1812_vm14 = vcmask 1042432  }
  0xaa   : > { %1263 = vmatpush1.bf16.msra.mxu0 %v2245_v19  ;;  %1389 = vmatpush1.bf16.msra.mxu1 %v2246_v20  ;;  %v2291_v59 = vld [vmem:[#allocation7 + $0x18c] ss:$16 sps:$4 sm:$0xff]   ;;  %vm2837_vm3 = vmpackc.low %vm367_vm1, %vm367_vm1  ;;  %v390_v61 = vsel %vm2830_vm2, %v301_v53, 0  ;;  %v2293_v0 = vld [vmem:[#allocation7 + $0x180] ss:$16 sps:$4 sm:$0xff]   ;;  %vm1817_vm15 = vcmask 1043456  }
  0xab   : > { %1264 = vmatprep.subr.bf16.mxu0 %v2247_v21  ;;  %1390 = vmatprep.subr.bf16.mxu1 %v2249_v22  ;;  %v392_v62 = vsel %vm2837_vm3, %v303_v56, 0  ;;  %v2294_v1 = vld [vmem:[#allocation7 + $0x188] ss:$16 sps:$4 sm:$0xff]   ;;  %v2295_v2 = vld [vmem:[#allocation7 + $0x1a4] ss:$16 sps:$4 sm:$0xff]   ;;  %v355_v21 = vadd.s32 16, %v2811_v36 }
  0xac   : > { %v1964_v63 = vcombine.high %v390_v61, %v392_v62  ;;  %v2297_v3 = vld [vmem:[#allocation7 + $0x1ac] ss:$16 sps:$4 sm:$0xff]   ;;  %v2299_v4 = vld [vmem:[#allocation7 + $0x1a0] ss:$16 sps:$4 sm:$0xff]   ;;  %v2300_v5 = vld [vmem:[#allocation7 + $0x1a8] ss:$16 sps:$4 sm:$0xff]   ;;  %v1963_v16 = vcombine.low %v390_v61, %v392_v62 }
  0xad   : > { %v2301_v6 = vld [vmem:[#allocation7 + $0x1c4] ss:$16 sps:$4 sm:$0xff]   ;;  %v2303_v7 = vld [vmem:[#allocation7 + $0x1cc] ss:$16 sps:$4 sm:$0xff]   ;;  %v2305_v8 = vld [vmem:[#allocation7 + $0x1c0] ss:$16 sps:$4 sm:$0xff]  }
  0xae   : > { %1265 = vmatpush1.bf16.msra.mxu0 %v2251_v23  ;;  %1391 = vmatpush1.bf16.msra.mxu1 %v2252_v24  ;;  %v2306_v9 = vld [vmem:[#allocation7 + $0x1c8] ss:$16 sps:$4 sm:$0xff]   ;;  %v2307_v10 = vld [vmem:[#allocation7 + $0x1e4] ss:$16 sps:$4 sm:$0xff]   ;;  %v2309_v11 = vld [vmem:[#allocation7 + $0x1ec] ss:$16 sps:$4 sm:$0xff]  }
  0xaf   : > { %1266 = vmatprep.subr.bf16.mxu0 %v2253_v25  ;;  %1392 = vmatprep.subr.bf16.mxu1 %v2255_v26  ;;  %v2311_v12 = vld [vmem:[#allocation7 + $0x1e0] ss:$16 sps:$4 sm:$0xff]   ;;  %v2312_v13 = vld [vmem:[#allocation7 + $0x1e8] ss:$16 sps:$4 sm:$0xff]   ;;  %v2315_v14 = vld [vmem:[#allocation7 + $0x204] ss:$16 sps:$4 sm:$0xff]  }
  0xb0   : > { %1286 = vmatprep.mubr.bf16.mxu0 %v1964_v63  ;;  %1412 = vmatprep.mubr.bf16.mxu1 %v1964_v63  ;;  %v2318_v15 = vld [vmem:[#allocation7 + $0x20c] ss:$16 sps:$4 sm:$0xff]   ;;  %v2313_v17 = vld [vmem:[#allocation7 + $0x200] ss:$16 sps:$4 sm:$0xff]   ;;  %v2316_v18 = vld [vmem:[#allocation7 + $0x208] ss:$16 sps:$4 sm:$0xff]  }
  0xb1   : > { %v2321_v19 = vld [vmem:[#allocation7 + $0x224] ss:$16 sps:$4 sm:$0xff]   ;;  %v2324_v20 = vld [vmem:[#allocation7 + $0x22c] ss:$16 sps:$4 sm:$0xff]   ;;  %v356_v22 = vadd.s32 24, %v2811_v36  ;;  %s2593_s15 = smov [#allocation8]  }
  0xb2   : > { %1267 = vmatpush1.bf16.msra.mxu0 %v2257_v27  ;;  %1393 = vmatpush1.bf16.msra.mxu1 %v2258_v28  ;;  %v2319_v23 = vld [vmem:[#allocation7 + $0x220] ss:$16 sps:$4 sm:$0xff]   ;;  %v2322_v24 = vld [vmem:[#allocation7 + $0x228] ss:$16 sps:$4 sm:$0xff]   ;;  %v2327_v25 = vld [vmem:[#allocation7 + $0x244] ss:$16 sps:$4 sm:$0xff]   ;;  %v2848_v27 = vadd.s32 %v2814_v42, %v355_v21 }
  0xb3   : > { %1268 = vmatprep.subr.bf16.mxu0 %v2259_v29  ;;  %1394 = vmatprep.subr.bf16.mxu1 %v2261_v30  ;;  %v2330_v26 = vld [vmem:[#allocation7 + $0x24c] ss:$16 sps:$4 sm:$0xff]   ;;  %v2851_v28 = vadd.s32 %v2814_v42, %v356_v22  ;;  %v2325_v29 = vld [vmem:[#allocation7 + $0x240] ss:$16 sps:$4 sm:$0xff]   ;;  %v2328_v30 = vld [vmem:[#allocation7 + $0x248] ss:$16 sps:$4 sm:$0xff]  }
  0xb4   : > { %v2333_v31 = vld [vmem:[#allocation7 + $0x264] ss:$16 sps:$4 sm:$0xff]   ;;  %vm368_vm4 = vcmp.lt.s32.totalorder %v2848_v27, 50  ;;  %v302_v56 = vld [vmem:[%s2792_s9 + $0x8] sm:$0xff]  ;;  %v2355_v60 = vld [vmem:[#allocation7 + $0x2e0] ss:$16 sps:$4 sm:$0xff]  }
  0xb5   : > { %vm369_vm5 = vcmp.lt.s32.totalorder %v2851_v28, 50  ;;  %v307_v41 = vld [vmem:[%s2792_s9 + $0x30] sm:$0xff]  ;;  %vm2862_vm6 = vmpackc.low %vm368_vm4, %vm368_vm4  ;;  %v309_v61 = vld [vmem:[%s2792_s9 + $0x40] sm:$0xff]  ;;  %s1845_s25 = sshll.u32 %s2593_s15, 4  ;;  %p2158_p3 = scmp.eq.s32.totalorder %s2643_s18, 1  ;;  %s1846_s25 = int_to_ptr.vmem [resolvable:$true] %s1845_s25 }
  0xb6   : > { %1269 = vmatpush1.bf16.msra.mxu0 %v2263_v32  ;;  %1395 = vmatpush1.bf16.msra.mxu1 %v2264_v33  ;;  %v2336_v32 = vld [vmem:[#allocation7 + $0x26c] ss:$16 sps:$4 sm:$0xff]   ;;  %v357_v33 = vadd.s32 32, %v2811_v36  ;;  %vm2872_vm7 = vmpackc.low %vm369_vm5, %vm369_vm5  ;;  %v311_v62 = vld [vmem:[%s2792_s9 + $0x50] sm:$0xff]  ;;  %s2493_s27 = scalar_lea.vmem %s1846_s25, 512  ;;  %p2500_p12 = scmp.lt.s32.totalorder %s1846_s25, %s1846_s25 }
  0xb7   : > { %1270 = vmatprep.subr.bf16.mxu0 %v2265_v34  ;;  %1396 = vmatprep.subr.bf16.mxu1 %v2267_v35  ;;  %v2331_v34 = vld [vmem:[#allocation7 + $0x260] ss:$16 sps:$4 sm:$0xff]   ;;  %v358_v35 = vadd.s32 40, %v2811_v36  ;;  %v2370_v21 = vld [vmem:[#allocation7 + $0x328] ss:$16 sps:$4 sm:$0xff]   ;;  %p2494_p8 = scmp.ne.s32.totalorder %s1846_s25, %s2493_s27  ;;  %p2501_p2 = scmp.lt.s32.totalorder %s2493_s27, %s2493_s27 }
  0xb8   : > { %v2867_v36 = vadd.s32 %v2814_v42, %v357_v33  ;;  %v2375_v22 = vld [vmem:[#allocation7 + $0x344] ss:$16 sps:$4 sm:$0xff]   ;;  %v2390_v33 = vld [vmem:[#allocation7 + $0x38c] ss:$16 sps:$4 sm:$0xff]  }
  0xb9   : > { %v2937_v63 = vld [vmem:[%s2799_s5 + $0x18] sm:$0xff]  ;;  %p2495_p10 = pnand %p2494_p8, %p2158_p3  ;;  %p2502_p4 = por %p2501_p2, %p2500_p12 }
  0xba   : > { %1271 = vmatpush1.bf16.msra.mxu0 %v2269_v37  ;;  %1397 = vmatpush1.bf16.msra.mxu1 %v2270_v38  ;;  %v2334_v37 = vld [vmem:[#allocation7 + $0x268] ss:$16 sps:$4 sm:$0xff]   ;;  %v2339_v38 = vld [vmem:[#allocation7 + $0x284] ss:$16 sps:$4 sm:$0xff]   ;;  %vm370_vm8 = vcmp.lt.s32.totalorder %v2867_v36, 50 }
  0xbb   : > { %1272 = vmatprep.subr.bf16.mxu0 %v2271_v39  ;;  %1398 = vmatprep.subr.bf16.mxu1 %v2273_v40  ;;  %v2342_v39 = vld [vmem:[#allocation7 + $0x28c] ss:$16 sps:$4 sm:$0xff]   ;;  %v305_v40 = vld [vmem:[%s2792_s9 + $0x20] sm:$0xff]  ;;  %vm2892_vm10 = vmpackc.low %vm370_vm8, %vm370_vm8  ;;  %p2496_p0 = pneg %p2495_p10 }
  0xbd   : > { %p2503_p6 = pnand %p2502_p4, %p2496_p0 }
  0xbe   : > { %1273 = vmatpush1.bf16.msra.mxu0 %v2275_v43  ;;  %1399 = vmatpush1.bf16.msra.mxu1 %v2276_v44 }
  0xbf   : > { %1274 = vmatprep.subr.bf16.mxu0 %v2277_v45  ;;  %1400 = vmatprep.subr.bf16.mxu1 %v2279_v46  ;;  %v394_v45 = vsel %vm2862_vm6, %v305_v40, 0  ;;  %v2879_v46 = vadd.s32 %v2814_v42, %v358_v35  ;;  %v304_v42 = vld [vmem:[%s2792_s9 + $0x18] sm:$0xff] }
  0xc0   : > { %v2388_v35 = vld [vmem:[#allocation7 + $0x388] ss:$16 sps:$4 sm:$0xff]  }
  0xc1   : > { %vm371_vm9 = vcmp.lt.s32.totalorder %v2879_v46, 50  ;;  %v2394_v40 = vld [vmem:[#allocation7 + $0x3a8] ss:$16 sps:$4 sm:$0xff]  }
  0xc2   : > { %1275 = vmatpush1.bf16.msra.mxu0 %v2281_v49  ;;  %1401 = vmatpush1.bf16.msra.mxu1 %v2282_v50  ;;  %v396_v49 = vsel %vm2872_vm7, %v307_v41, 0  ;;  %v2337_v50 = vld [vmem:[#allocation7 + $0x280] ss:$16 sps:$4 sm:$0xff]   ;;  %vm2899_vm11 = vmpackc.low %vm371_vm9, %vm371_vm9  ;;  %v2399_v41 = vld [vmem:[#allocation7 + $0x3c4] ss:$16 sps:$4 sm:$0xff]  }
  0xc3   : > { %1276 = vmatprep.subr.bf16.mxu0 %v2283_v51  ;;  %1402 = vmatprep.subr.bf16.mxu1 %v2285_v52  ;;  %v2340_v51 = vld [vmem:[#allocation7 + $0x288] ss:$16 sps:$4 sm:$0xff]   ;;  %v1968_v52 = vcombine.high %v394_v45, %v396_v49  ;;  %v1967_v53 = vcombine.low %v394_v45, %v396_v49  ;;  %v2402_v45 = vld [vmem:[#allocation7 + $0x3cc] ss:$16 sps:$4 sm:$0xff]   ;;  %v2397_v49 = vld [vmem:[#allocation7 + $0x3c0] ss:$16 sps:$4 sm:$0xff]  }
  0xc6   : > { %1277 = vmatpush1.bf16.msra.mxu0 %v2287_v54  ;;  %1403 = vmatpush1.bf16.msra.mxu1 %v2288_v55  ;;  %v2345_v54 = vld [vmem:[#allocation7 + $0x2a4] ss:$16 sps:$4 sm:$0xff]   ;;  %v2348_v55 = vld [vmem:[#allocation7 + $0x2ac] ss:$16 sps:$4 sm:$0xff]  }
  0xc7   : > { %1278 = vmatprep.subr.bf16.mxu0 %v2289_v58  ;;  %1404 = vmatprep.subr.bf16.mxu1 %v2291_v59  ;;  %v2343_v58 = vld [vmem:[#allocation7 + $0x2a0] ss:$16 sps:$4 sm:$0xff]   ;;  %v2346_v59 = vld [vmem:[#allocation7 + $0x2a8] ss:$16 sps:$4 sm:$0xff]  }
  0xca   : > { %1279 = vmatpush1.bf16.msra.mxu0 %v2293_v0  ;;  %1405 = vmatpush1.bf16.msra.mxu1 %v2294_v1  ;;  %v2351_v0 = vld [vmem:[#allocation7 + $0x2c4] ss:$16 sps:$4 sm:$0xff]   ;;  %v2354_v1 = vld [vmem:[#allocation7 + $0x2cc] ss:$16 sps:$4 sm:$0xff]  }
  0xcb   : > { %1280 = vmatprep.subr.bf16.mxu0 %v2295_v2  ;;  %1406 = vmatprep.subr.bf16.mxu1 %v2297_v3  ;;  %v398_v3 = vsel %vm2892_vm10, %v309_v61, 0 }
  0xce   : > { %1281 = vmatpush1.bf16.msra.mxu0 %v2299_v4  ;;  %1407 = vmatpush1.bf16.msra.mxu1 %v2300_v5  ;;  %v400_v4 = vsel %vm2899_vm11, %v311_v62, 0  ;;  %v2909_v5 = vsel %vm2830_vm2, %v302_v56, 0  ;;  %v2406_v56 = vld [vmem:[#allocation7 + $0x3e8] ss:$16 sps:$4 sm:$0xff]  }
  0xcf   : > { %1282 = vmatprep.subr.bf16.mxu0 %v2301_v6  ;;  %1408 = vmatprep.subr.bf16.mxu1 %v2303_v7  ;;  %v2913_v6 = vsel %vm2837_vm3, %v304_v42, 0  ;;  %v1972_v7 = vcombine.high %v398_v3, %v400_v4  ;;  %v310_v62 = vld [vmem:[%s2792_s9 + $0x48] sm:$0xff] }
  0xd0   : > { %v1966_v57 = vcombine.high %v2909_v5, %v2913_v6  ;;  %v399_v43 = vsel %vm2892_vm10, %v310_v62, 0 }
  0xd2   : > { %1283 = vmatpush1.bf16.msra.mxu0 %v2305_v8  ;;  %1409 = vmatpush1.bf16.msra.mxu1 %v2306_v9  ;;  %v1971_v8 = vcombine.low %v398_v3, %v400_v4  ;;  %v2349_v9 = vld [vmem:[#allocation7 + $0x2c0] ss:$16 sps:$4 sm:$0xff]  }
  0xd3   : > { %1284 = vmatprep.subr.bf16.mxu0 %v2307_v10  ;;  %1410 = vmatprep.subr.bf16.mxu1 %v2309_v11  ;;  %v2352_v10 = vld [vmem:[#allocation7 + $0x2c8] ss:$16 sps:$4 sm:$0xff]   ;;  %v2357_v11 = vld [vmem:[#allocation7 + $0x2e4] ss:$16 sps:$4 sm:$0xff]  }
  0xd6   : > { %1285 = vmatpush1.bf16.msra.mxu0 %v2311_v12  ;;  %1411 = vmatpush1.bf16.msra.mxu1 %v2312_v13  ;;  %v2360_v12 = vld [vmem:[#allocation7 + $0x2ec] ss:$16 sps:$4 sm:$0xff]   ;;  %v2358_v13 = vld [vmem:[#allocation7 + $0x2e8] ss:$16 sps:$4 sm:$0xff]  }
  0xd7   : > { %1317 = vmatprep.subr.bf16.mxu0 %v2315_v14  ;;  %1443 = vmatprep.subr.bf16.mxu1 %v2318_v15  ;;  %v2363_v14 = vld [vmem:[#allocation7 + $0x304] ss:$16 sps:$4 sm:$0xff]   ;;  %v2366_v15 = vld [vmem:[#allocation7 + $0x30c] ss:$16 sps:$4 sm:$0xff]  }
  0xd9   : > { %1287 = vmatmul.mubr.bf16.vlgmr.msra.gmra.mrb[0].mxu0 %v1963_v16  ;;  %1413 = vmatmul.mubr.bf16.vlgmr.msra.gmra.mrb[0].mxu1 %v1963_v16  ;;  %v2361_v16 = vld [vmem:[#allocation7 + $0x300] ss:$16 sps:$4 sm:$0xff]  }
  0xda   : > { %1318 = vmatpush1.bf16.msra.mxu0 %v2313_v17  ;;  %1444 = vmatpush1.bf16.msra.mxu1 %v2316_v18  ;;  %v2364_v17 = vld [vmem:[#allocation7 + $0x308] ss:$16 sps:$4 sm:$0xff]   ;;  %v2369_v18 = vld [vmem:[#allocation7 + $0x324] ss:$16 sps:$4 sm:$0xff]  }
  0xdb   : > { %1319 = vmatprep.subr.bf16.mxu0 %v2321_v19  ;;  %1445 = vmatprep.subr.bf16.mxu1 %v2324_v20  ;;  %v2372_v19 = vld [vmem:[#allocation7 + $0x32c] ss:$16 sps:$4 sm:$0xff]   ;;  %v2367_v20 = vld [vmem:[#allocation7 + $0x320] ss:$16 sps:$4 sm:$0xff]  }
  0xdc   : > { %1296 = vmatprep.mubr.bf16.mxu0 %v1968_v52  ;;  %1422 = vmatprep.mubr.bf16.mxu1 %v1968_v52  ;;  %v2408_v52 = vld [vmem:[#allocation7 + $0x3ec] ss:$16 sps:$4 sm:$0xff]  }
  0xde   : > { %1320 = vmatpush1.bf16.msra.mxu0 %v2319_v23  ;;  %1446 = vmatpush1.bf16.msra.mxu1 %v2322_v24  ;;  %v2378_v23 = vld [vmem:[#allocation7 + $0x34c] ss:$16 sps:$4 sm:$0xff]   ;;  %v2373_v24 = vld [vmem:[#allocation7 + $0x340] ss:$16 sps:$4 sm:$0xff]  }
  0xdf   : > { %1321 = vmatprep.subr.bf16.mxu0 %v2327_v25  ;;  %1447 = vmatprep.subr.bf16.mxu1 %v2330_v26  ;;  %v2376_v25 = vld [vmem:[#allocation7 + $0x348] ss:$16 sps:$4 sm:$0xff]   ;;  %v2381_v26 = vld [vmem:[#allocation7 + $0x364] ss:$16 sps:$4 sm:$0xff]  }
  0xe1   : > { %1297 = vmatmul.mubr.bf16.gmra.mrb[4].mxu0 %v1967_v53  ;;  %1423 = vmatmul.mubr.bf16.gmra.mrb[4].mxu1 %v1967_v53  ;;  %v306_v53 = vld [vmem:[%s2792_s9 + $0x28] sm:$0xff] }
  0xe2   : > { %1322 = vmatpush1.bf16.msra.mxu0 %v2325_v29  ;;  %1448 = vmatpush1.bf16.msra.mxu1 %v2328_v30  ;;  %v2384_v29 = vld [vmem:[#allocation7 + $0x36c] ss:$16 sps:$4 sm:$0xff]   ;;  %v2379_v30 = vld [vmem:[#allocation7 + $0x360] ss:$16 sps:$4 sm:$0xff]   ;;  %v395_v42 = vsel %vm2862_vm6, %v306_v53, 0 }
  0xe3   : > { %1323 = vmatprep.subr.bf16.mxu0 %v2333_v31  ;;  %1449 = vmatprep.subr.bf16.mxu1 %v2336_v32  ;;  %v2382_v31 = vld [vmem:[#allocation7 + $0x368] ss:$16 sps:$4 sm:$0xff]   ;;  %v2387_v32 = vld [vmem:[#allocation7 + $0x384] ss:$16 sps:$4 sm:$0xff]  }
  0xe4   : > { %1306 = vmatprep.mubr.bf16.mxu0 %v1972_v7  ;;  %1432 = vmatprep.mubr.bf16.mxu1 %v1972_v7  ;;  %v315_v7 = vld [vmem:[%s2799_s5 + $0x10] sm:$0xff] }
  0xe6   : > { %1324 = vmatpush1.bf16.msra.mxu0 %v2331_v34  ;;  %1450 = vmatpush1.bf16.msra.mxu1 %v2334_v37  ;;  %v2385_v34 = vld [vmem:[#allocation7 + $0x380] ss:$16 sps:$4 sm:$0xff]   ;;  %v2393_v37 = vld [vmem:[#allocation7 + $0x3a4] ss:$16 sps:$4 sm:$0xff]  }
  0xe7   : > { %1325 = vmatprep.subr.bf16.mxu0 %v2339_v38  ;;  %1451 = vmatprep.subr.bf16.mxu1 %v2342_v39  ;;  %v2396_v38 = vld [vmem:[#allocation7 + $0x3ac] ss:$16 sps:$4 sm:$0xff]   ;;  %v2391_v39 = vld [vmem:[#allocation7 + $0x3a0] ss:$16 sps:$4 sm:$0xff]  }
  0xe9   : > { %1307 = vmatmul.mubr.bf16.gmra.mrb[8].mxu0 %v1971_v8  ;;  %1433 = vmatmul.mubr.bf16.gmra.mrb[8].mxu1 %v1971_v8 }
  0xea   : > { %1326 = vmatpush1.bf16.msra.mxu0 %v2337_v50  ;;  %1452 = vmatpush1.bf16.msra.mxu1 %v2340_v51  ;;  %v2400_v50 = vld [vmem:[#allocation7 + $0x3c8] ss:$16 sps:$4 sm:$0xff]   ;;  %v2405_v51 = vld [vmem:[#allocation7 + $0x3e4] ss:$16 sps:$4 sm:$0xff]  }
  0xeb   : > { %1327 = vmatprep.subr.bf16.mxu0 %v2345_v54  ;;  %1453 = vmatprep.subr.bf16.mxu1 %v2348_v55  ;;  %v308_v54 = vld [vmem:[%s2792_s9 + $0x38] sm:$0xff]  ;;  %v2403_v55 = vld [vmem:[#allocation7 + $0x3e0] ss:$16 sps:$4 sm:$0xff]  }
  0xec   : > { %1349 = vmatprep.mubr.bf16.mxu0 %v1966_v57  ;;  %1475 = vmatprep.mubr.bf16.mxu1 %v1966_v57  ;;  %v330_v57 = vunpack.c.h.bf16 %v315_v7 }
  0xee   : > { %1328 = vmatpush1.bf16.msra.mxu0 %v2343_v58  ;;  %1454 = vmatpush1.bf16.msra.mxu1 %v2346_v59  ;;  %v397_v58 = vsel %vm2872_vm7, %v308_v54, 0  ;;  %v1965_v59 = vcombine.low %v2909_v5, %v2913_v6  ;;  %v313_v5 = vld [vmem:[%s2799_s5] sm:$0xff]  ;;  %v2933_v6 = vld [vmem:[%s2799_s5 + $0x8] sm:$0xff] }
  0xef   : > { %1329 = vmatprep.subr.bf16.mxu0 %v2351_v0  ;;  %1455 = vmatprep.subr.bf16.mxu1 %v2354_v1  ;;  %v1970_v61 = vcombine.high %v395_v42, %v397_v58  ;;  %v312_v0 = vld [vmem:[%s2792_s9 + $0x58] sm:$0xff]  ;;  %v1969_v1 = vcombine.low %v395_v42, %v397_v58  ;;  %v325_v8 = vunpack.c.l.bf16 %v313_v5  ;;  %v327_v2 = vunpack.c.l.bf16 %v2933_v6  ;;  %v3012_v54 = vld [vmem:[%s2799_s5 + $0x48] sm:$0xff] }
  0xf0   : > { %v401_v44 = vsel %vm2899_vm11, %v312_v0, 0  ;;  %v328_v0 = vunpack.c.h.bf16 %v2933_v6 }
  0xf1   : > { %v1974_v3 = vcombine.high %v399_v43, %v401_v44  ;;  %v1973_v4 = vcombine.low %v399_v43, %v401_v44  ;;  %v343_v44 = vunpack.c.l.bf16 %v3012_v54 }
  0xf2   : > { %1330 = vmatpush1.bf16.msra.mxu0 %v2349_v9  ;;  %1456 = vmatpush1.bf16.msra.mxu1 %v2352_v10  ;;  %v329_v9 = vunpack.c.l.bf16 %v315_v7  ;;  %v331_v10 = vunpack.c.l.bf16 %v2937_v63  ;;  %v323_v7 = vld [vmem:[%s2799_s5 + $0x50] sm:$0xff] }
  0xf3   : > { %1331 = vmatprep.subr.bf16.mxu0 %v2357_v11  ;;  %1457 = vmatprep.subr.bf16.mxu1 %v2360_v12  ;;  %v317_v11 = vld [vmem:[%s2799_s5 + $0x20] sm:$0xff]  ;;  %v326_v12 = vunpack.c.h.bf16 %v313_v5 }
  0xf6   : > { %1332 = vmatpush1.bf16.msra.mxu0 %v2355_v60  ;;  %1458 = vmatpush1.bf16.msra.mxu1 %v2358_v13  ;;  %v2943_v60 = vld [vmem:[%s2799_s5 + $0x28] sm:$0xff]  ;;  %v2947_v13 = vsel %vm366_vm0, %v325_v8, 0.0  ;;  %v3035_v8 = vld [vmem:[%s2799_s5 + $0x58] sm:$0xff] }
  0xf7   : > { %1333 = vmatprep.subr.bf16.mxu0 %v2363_v14  ;;  %1459 = vmatprep.subr.bf16.mxu1 %v2366_v15  ;;  %v2951_v14 = vsel %vm366_vm0, %v327_v2, 0.0  ;;  %v2955_v15 = vsel %vm367_vm1, %v329_v9, 0.0 }
  0xfa   : > { %1334 = vmatpush1.bf16.msra.mxu0 %v2361_v16  ;;  %1460 = vmatpush1.bf16.msra.mxu1 %v2364_v17  ;;  %v333_v16 = vunpack.c.l.bf16 %v317_v11  ;;  %v1662_v17 = vmul.f32 %v2947_v13, %v2947_v13 }
  0xfb   : > { %1335 = vmatprep.subr.bf16.mxu0 %v2369_v18  ;;  %1461 = vmatprep.subr.bf16.mxu1 %v2372_v19  ;;  %v1664_v18 = vmul.f32 %v2951_v14, %v2951_v14  ;;  %v1666_v19 = vmul.f32 %v2955_v15, %v2955_v15 }
  0xfe   : > { %1336 = vmatpush1.bf16.msra.mxu0 %v2367_v20  ;;  %1462 = vmatpush1.bf16.msra.mxu1 %v2370_v21  ;;  %v2965_v20 = vsel %vm367_vm1, %v331_v10, 0.0  ;;  %v319_v21 = vld [vmem:[%s2799_s5 + $0x30] sm:$0xff] }
  0xff   : > { %1337 = vmatprep.subr.bf16.mxu0 %v2375_v22  ;;  %1463 = vmatprep.subr.bf16.mxu1 %v2378_v23  ;;  %v2970_v22 = vsel %vm366_vm0, %v326_v12, 0.0  ;;  %v1668_v23 = vmul.f32 %v2965_v20, %v2965_v20  ;;  %v338_v58 = vunpack.c.h.bf16 %v319_v21 }
 0x101   : > { %v3041_v10 = vsel %vm369_vm5, %v338_v58, 0.0 }
 0x102   : > { %1338 = vmatpush1.bf16.msra.mxu0 %v2373_v24  ;;  %1464 = vmatpush1.bf16.msra.mxu1 %v2376_v25  ;;  %v2976_v24 = vsel %vm367_vm1, %v330_v57, 0.0  ;;  %v335_v25 = vunpack.c.l.bf16 %v2943_v60 }
 0x103   : > { %1339 = vmatprep.subr.bf16.mxu0 %v2381_v26  ;;  %1465 = vmatprep.subr.bf16.mxu1 %v2384_v29  ;;  %v1663_v26 = vmul.f32 %v2970_v22, %v2970_v22  ;;  %v1618_v29 = vadd.f32 %v2955_v15, %v2947_v13 }
 0x106   : > { %1340 = vmatpush1.bf16.msra.mxu0 %v2379_v30  ;;  %1466 = vmatpush1.bf16.msra.mxu1 %v2382_v31  ;;  %v1667_v30 = vmul.f32 %v2976_v24, %v2976_v24  ;;  %v334_v31 = vunpack.c.h.bf16 %v317_v11 }
 0x107   : > { %1341 = vmatprep.subr.bf16.mxu0 %v2387_v32  ;;  %1467 = vmatprep.subr.bf16.mxu1 %v2390_v33  ;;  %v2986_v32 = vld [vmem:[%s2799_s5 + $0x38] sm:$0xff]  ;;  %v1640_v33 = vadd.f32 %v2965_v20, %v2951_v14 }
 0x108   : > { %v3009_v53 = vsel %vm368_vm4, %v334_v31, 0.0 }
 0x10a   : > { %1342 = vmatpush1.bf16.msra.mxu0 %v2385_v34  ;;  %1468 = vmatpush1.bf16.msra.mxu1 %v2388_v35  ;;  %v2992_v34 = vsel %vm368_vm4, %v333_v16, 0.0  ;;  %v337_v35 = vunpack.c.l.bf16 %v319_v21 }
 0x10b   : > { %1343 = vmatprep.subr.bf16.mxu0 %v2393_v37  ;;  %1469 = vmatprep.subr.bf16.mxu1 %v2396_v38  ;;  %v1686_v37 = vadd.f32 %v1666_v19, %v1662_v17  ;;  %v1670_v38 = vmul.f32 %v2992_v34, %v2992_v34  ;;  %v3053_v17 = vsel %vm370_vm8, %v343_v44, 0.0  ;;  %v347_v19 = vunpack.c.l.bf16 %v3035_v8 }
 0x10c   : > { %v3019_v42 = vsel %vm369_vm5, %v337_v35, 0.0 }
 0x10d   : > { %v3080_v48 = vsel %vm371_vm9, %v347_v19, 0.0 }
 0x10e   : > { %1344 = vmatpush1.bf16.msra.mxu0 %v2391_v39  ;;  %1470 = vmatpush1.bf16.msra.mxu1 %v2394_v40  ;;  %v1708_v39 = vadd.f32 %v1668_v23, %v1664_v18  ;;  %v1629_v40 = vadd.f32 %v2976_v24, %v2970_v22  ;;  %v345_v18 = vunpack.c.l.bf16 %v323_v7  ;;  %v1680_v23 = vmul.f32 %v3053_v17, %v3053_v17 }
 0x10f   : > { %1345 = vmatprep.subr.bf16.mxu0 %v2399_v41  ;;  %1471 = vmatprep.subr.bf16.mxu1 %v2402_v45  ;;  %v3000_v41 = vsel %vm368_vm4, %v335_v25, 0.0  ;;  %v339_v45 = vunpack.c.l.bf16 %v2986_v32  ;;  %v3060_v25 = vsel %vm366_vm0, %v328_v0, 0.0  ;;  %vm1822_vm0 = vcmask 1044480  }
 0x111   : > { %v3026_v43 = vsel %vm369_vm5, %v339_v45, 0.0 }
 0x112   : > { %1346 = vmatpush1.bf16.msra.mxu0 %v2397_v49  ;;  %1472 = vmatpush1.bf16.msra.mxu1 %v2400_v50  ;;  %v321_v49 = vld [vmem:[%s2799_s5 + $0x40] sm:$0xff]  ;;  %v1697_v50 = vadd.f32 %v1667_v30, %v1663_v26  ;;  %v1676_v5 = vmul.f32 %v3026_v43, %v3026_v43 }
 0x113   : > { %1347 = vmatprep.subr.bf16.mxu0 %v2405_v51  ;;  %1473 = vmatprep.subr.bf16.mxu1 %v2408_v52  ;;  %v1619_v51 = vadd.f32 %v1618_v29, %v2992_v34  ;;  %v1672_v52 = vmul.f32 %v3000_v41, %v3000_v41  ;;  %v341_v62 = vunpack.c.l.bf16 %v321_v49  ;;  %v342_v57 = vunpack.c.h.bf16 %v321_v49 }
 0x114   : > { %v336_v29 = vunpack.c.h.bf16 %v2943_v60  ;;  %v346_v60 = vunpack.c.h.bf16 %v323_v7  ;;  %v1684_v49 = vmul.f32 %v3080_v48, %v3080_v48 }
 0x115   : > { %v1620_v6 = vadd.f32 %v1619_v51, %v3019_v42  ;;  %v3047_v12 = vsel %vm370_vm8, %v341_v62, 0.0 }
 0x116   : > { %1348 = vmatpush1.bf16.msra.mxu0 %v2403_v55  ;;  %1474 = vmatpush1.bf16.msra.mxu1 %v2406_v56  ;;  %v1641_v55 = vadd.f32 %v1640_v33, %v3000_v41  ;;  %v1671_v56 = vmul.f32 %v3009_v53, %v3009_v53  ;;  %v1678_v16 = vmul.f32 %v3047_v12, %v3047_v12  ;;  %v3104_v62 = vsel %vm371_vm9, %v346_v60, 0.0 }
 0x117   : > { %v1621_v33 = vadd.f32 %v1620_v6, %v3047_v12  ;;  %v1683_v27 = vmul.f32 %v3104_v62, %v3104_v62 }
 0x118   : > { %v1698_v2 = vadd.f32 %v1697_v50, %v1671_v56  ;;  %v1642_v9 = vadd.f32 %v1641_v55, %v3026_v43  ;;  %v1665_v50 = vmul.f32 %v3060_v25, %v3060_v25  ;;  %v3096_v55 = vsel %vm368_vm4, %v336_v29, 0.0 }
 0x119   : > { %1350 = vmatmul.mubr.bf16.vlgmr.msra.gmra.mrb[0].mxu0 %v1965_v59  ;;  %1476 = vmatmul.mubr.bf16.vlgmr.msra.gmra.mrb[0].mxu1 %v1965_v59  ;;  %v1687_v59 = vadd.f32 %v1686_v37, %v1670_v38  ;;  %v3072_v37 = vsel %vm370_vm8, %v342_v57, 0.0  ;;  %v3076_v38 = vsel %vm371_vm9, %v345_v18, 0.0  ;;  %v340_v56 = vunpack.c.h.bf16 %v2986_v32 }
 0x11a   : > { %1359 = vmatprep.mubr.bf16.mxu0 %v1970_v61  ;;  %1485 = vmatprep.mubr.bf16.mxu1 %v1970_v61  ;;  %v1674_v61 = vmul.f32 %v3019_v42, %v3019_v42  ;;  %v1643_v35 = vadd.f32 %v1642_v9, %v3053_v17  ;;  %v1682_v45 = vmul.f32 %v3076_v38, %v3076_v38 }
 0x11b   : > { %v1673_v32 = vmul.f32 %v3096_v55, %v3096_v55  ;;  %v3115_v9 = vsel %vm369_vm5, %v340_v56, 0.0 }
 0x11c   : > { %v1688_v11 = vadd.f32 %v1687_v59, %v1674_v61  ;;  %v1622_v59 = vadd.f32 %v1621_v33, %v3076_v38  ;;  %v1644_v61 = vadd.f32 %v1643_v35, %v3080_v48  ;;  %v1677_v18 = vmul.f32 %v3115_v9, %v3115_v9 }
 0x11d   : > { %v348_v33 = vunpack.c.h.bf16 %v3035_v8 }
 0x11e   : > { %v1689_v47 = vadd.f32 %v1688_v11, %v1678_v16  ;;  %v1623_v7 = vrot.slane %v1622_v59, 4 }
 0x120   : > { %v1690_v44 = vadd.f32 %v1689_v47, %v1682_v45 }
 0x121   : > { %1360 = vmatmul.mubr.bf16.gmra.mrb[4].mxu0 %v1969_v1  ;;  %1486 = vmatmul.mubr.bf16.gmra.mrb[4].mxu1 %v1969_v1  ;;  %v332_v1 = vunpack.c.h.bf16 %v2937_v63  ;;  %v1675_v63 = vmul.f32 %v3041_v10, %v3041_v10 }
 0x122   : > { %1369 = vmatprep.mubr.bf16.mxu0 %v1974_v3  ;;  %1495 = vmatprep.mubr.bf16.mxu1 %v1974_v3  ;;  %v1709_v3 = vadd.f32 %v1708_v39, %v1672_v52  ;;  %v1691_v11 = vrot.slane %v1690_v44, 4 }
 0x123   : > { %v3064_v26 = vsel %vm367_vm1, %v332_v1, 0.0  ;;  %v1699_v31 = vadd.f32 %v1698_v2, %v1675_v63  ;;  %v1645_v2 = vrot.slane %v1644_v61, 4 }
 0x124   : > { %v1710_v21 = vadd.f32 %v1709_v3, %v1676_v5  ;;  %v1669_v51 = vmul.f32 %v3064_v26, %v3064_v26  ;;  %v1651_v52 = vadd.f32 %v3064_v26, %v3060_v25  ;;  %v344_v5 = vunpack.c.h.bf16 %v3012_v54 }
 0x126   : > { %v1711_v39 = vadd.f32 %v1710_v21, %v1680_v23  ;;  %v1719_v3 = vadd.f32 %v1669_v51, %v1665_v50  ;;  %v3122_v54 = vsel %vm370_vm8, %v344_v5, 0.0  ;;  %v1624_v21 = vadd.f32 %v1623_v7, %v1622_v59 }
 0x127   : > { %v1646_v23 = vadd.f32 %v1645_v2, %v1644_v61  ;;  %v1681_v47 = vmul.f32 %v3122_v54, %v3122_v54  ;;  %v3130_v51 = vsel %vm371_vm9, %v348_v33, 0.0 }
 0x128   : > { %v1712_v1 = vadd.f32 %v1711_v39, %v1684_v49  ;;  %v1720_v16 = vadd.f32 %v1719_v3, %v1673_v32  ;;  %v1625_v39 = vrot.slane %v1624_v21, 2  ;;  %v1685_v8 = vmul.f32 %v3130_v51, %v3130_v51 }
 0x129   : > { %1370 = vmatmul.mubr.bf16.gmra.mrb[8].mxu0 %v1973_v4  ;;  %1496 = vmatmul.mubr.bf16.gmra.mrb[8].mxu1 %v1973_v4  ;;  %v1630_v4 = vadd.f32 %v1629_v40, %v3009_v53  ;;  %v1679_v40 = vmul.f32 %v3072_v37, %v3072_v37 }
 0x12a   : > { %v1713_v63 = vrot.slane %v1712_v1, 4  ;;  %v1721_v35 = vadd.f32 %v1720_v16, %v1677_v18  ;;  %v1626_v56 = vadd.f32 %v1625_v39, %v1624_v21 }
 0x12b   : > { %v1631_v30 = vadd.f32 %v1630_v4, %v3041_v10  ;;  %v1700_v0 = vadd.f32 %v1699_v31, %v1679_v40  ;;  %v1652_v4 = vadd.f32 %v1651_v52, %v3096_v55  ;;  %v1647_v40 = vrot.slane %v1646_v23, 2 }
 0x12c   : > { %v1714_v28 = vadd.f32 %v1713_v63, %v1712_v1  ;;  %v1722_v52 = vadd.f32 %v1721_v35, %v1681_v47  ;;  %v1627_v3 = vrot.slane %v1626_v56, 1 }
 0x12d   : > { %v1632_v58 = vadd.f32 %v1631_v30, %v3072_v37  ;;  %v1701_v57 = vadd.f32 %v1700_v0, %v1683_v27  ;;  %v1653_v19 = vadd.f32 %v1652_v4, %v3115_v9  ;;  %v1692_v30 = vadd.f32 %v1691_v11, %v1690_v44 }
 0x12e   : > { %v1715_v49 = vrot.slane %v1714_v28, 2  ;;  %v1723_v27 = vadd.f32 %v1722_v52, %v1685_v8  ;;  %v3135_v11 = vadd.f32 %v1627_v3, %v1626_v56 }
 0x12f   : > { %v1633_v6 = vadd.f32 %v1632_v58, %v3104_v62  ;;  %v1702_v31 = vrot.slane %v1701_v57, 4  ;;  %v1654_v60 = vadd.f32 %v1653_v19, %v3122_v54  ;;  %v1693_v36 = vrot.slane %v1692_v30, 2 }
 0x130   : > { %v1648_v58 = vadd.f32 %v1647_v40, %v1646_v23  ;;  %v1716_v0 = vadd.f32 %v1715_v49, %v1714_v28 }
 0x131   : > { %v1634_v29 = vrot.slane %v1633_v6, 4  ;;  %v1703_v50 = vadd.f32 %v1702_v31, %v1701_v57  ;;  %v1694_v61 = vadd.f32 %v1693_v36, %v1692_v30  ;;  %v1655_v1 = vadd.f32 %v1654_v60, %v3130_v51 }
 0x132   : > { %v1649_v32 = vrot.slane %v1648_v58, 1  ;;  %v1717_v46 = vrot.slane %v1716_v0, 1 }
 0x133   : > { %v1635_v45 = vadd.f32 %v1634_v29, %v1633_v6  ;;  %v1704_v44 = vrot.slane %v1703_v50, 2  ;;  %v1695_v5 = vrot.slane %v1694_v61, 1  ;;  %v1656_v2 = vrot.slane %v1655_v1, 4 }
 0x134   : > { %v1724_v6 = vrot.slane %v1723_v27, 4  ;;  %v3137_v63 = vadd.f32 %v1649_v32, %v1648_v58  ;;  %v3141_v21 = vadd.f32 %v1717_v46, %v1716_v0 }
 0x135   : > { %v1636_v59 = vrot.slane %v1635_v45, 2  ;;  %v1705_v7 = vadd.f32 %v1704_v44, %v1703_v50  ;;  %v3139_v19 = vadd.f32 %v1695_v5, %v1694_v61  ;;  %v3143_v29 = vadd.f32 %v1656_v2, %v1655_v1 }
 0x136   : > { %v3146_v47 = vadd.f32 %v1724_v6, %v1723_v27 }
 0x137   : > { %v1637_v4 = vadd.f32 %v1636_v59, %v1635_v45  ;;  %v1706_v23 = vrot.slane %v1705_v7, 1 }
 0x139   : > { %v1638_v57 = vrot.slane %v1637_v4, 1 }
 0x1ec   : > { %v1351_v16 = vpop.f32.mrb[0].mxu0  ;;  %v1477_v18 = vpop.f32.mrb[0].mxu1 }
 0x1ed   : > { %v1550_v30 = vmul.f32 %v1351_v16, %v1351_v16  ;;  %v1730_v28 = vmul.f32 %v1351_v16, %v2947_v13  ;;  %v1552_v31 = vmul.f32 %v1477_v18, %v1477_v18  ;;  %v1353_v33 = vpop.f32.mrb[1].mxu0  ;;  %v1479_v35 = vpop.f32.mrb[1].mxu1  ;;  %v1732_v60 = vmul.f32 %v1477_v18, %v2951_v14 }
 0x1ee   : > { %v1551_v39 = vmul.f32 %v1353_v33, %v1353_v33  ;;  %v1731_v40 = vmul.f32 %v1353_v33, %v2970_v22  ;;  %v1553_v45 = vmul.f32 %v1479_v35, %v1479_v35  ;;  %v1355_v36 = vpop.f32.mrb[2].mxu0  ;;  %v1481_v49 = vpop.f32.mrb[2].mxu1  ;;  %v1733_v2 = vmul.f32 %v1479_v35, %v3060_v25 }
 0x1ef   : > { %v1506_v50 = vadd.f32 %v1355_v36, %v1351_v16  ;;  %v1554_v52 = vmul.f32 %v1355_v36, %v1355_v36  ;;  %v1734_v8 = vmul.f32 %v1355_v36, %v2955_v15  ;;  %v1528_v56 = vadd.f32 %v1481_v49, %v1477_v18  ;;  %v1357_v58 = vpop.f32.mrb[3].mxu0  ;;  %v1483_v13 = vpop.f32.mrb[3].mxu1 }
 0x1f0   : > { %v1556_v59 = vmul.f32 %v1481_v49, %v1481_v49  ;;  %v1736_v61 = vmul.f32 %v1481_v49, %v2965_v20  ;;  %v1517_v0 = vadd.f32 %v1357_v58, %v1353_v33  ;;  %v1555_v44 = vmul.f32 %v1357_v58, %v1357_v58 }
 0x1f1   : > { %v1574_v1 = vadd.f32 %v1554_v52, %v1550_v30  ;;  %v1754_v14 = vadd.f32 %v1734_v8, %v1730_v28  ;;  %v1735_v27 = vmul.f32 %v1357_v58, %v2976_v24  ;;  %v1539_v22 = vadd.f32 %v1483_v13, %v1479_v35 }
 0x1f2   : > { %v1596_v3 = vadd.f32 %v1556_v59, %v1552_v31  ;;  %v1776_v32 = vadd.f32 %v1736_v61, %v1732_v60  ;;  %v1585_v5 = vadd.f32 %v1555_v44, %v1551_v39  ;;  %v1557_v46 = vmul.f32 %v1483_v13, %v1483_v13 }
 0x1f3   : > { %v1765_v15 = vadd.f32 %v1735_v27, %v1731_v40  ;;  %v1737_v6 = vmul.f32 %v1483_v13, %v3064_v26  ;;  %v3155_v16 = vadd.f32 %v1638_v57, %v1637_v4  ;;  %v3157_v36 = vadd.f32 %v1706_v23, %v1705_v7 }
 0x1f4   : > { %v1607_v18 = vadd.f32 %v1557_v46, %v1553_v45  ;;  %v1361_v20 = vpop.f32.mrb[4].mxu0  ;;  %v1487_v33 = vpop.f32.mrb[4].mxu1  ;;  %v1658_v30 = vrot.slane %v3143_v29, 2  ;;  %v1726_v24 = vrot.slane %v3146_v47, 2 }
 0x1f5   : > { %v1787_v28 = vadd.f32 %v1737_v6, %v1733_v2  ;;  %v1507_v31 = vadd.f32 %v1506_v50, %v1361_v20  ;;  %v1558_v60 = vmul.f32 %v1361_v20, %v1361_v20  ;;  %v1738_v39 = vmul.f32 %v1361_v20, %v2992_v34  ;;  %v1363_v25 = vpop.f32.mrb[5].mxu0  ;;  %v1489_v35 = vpop.f32.mrb[5].mxu1 }
 0x1f6   : > { %v1529_v40 = vadd.f32 %v1528_v56, %v1487_v33  ;;  %v1560_v26 = vmul.f32 %v1487_v33, %v1487_v33  ;;  %v1740_v4 = vmul.f32 %v1487_v33, %v3000_v41  ;;  %v1518_v57 = vadd.f32 %v1517_v0, %v1363_v25  ;;  %v1365_v45 = vpop.f32.mrb[6].mxu0  ;;  %v1491_v49 = vpop.f32.mrb[6].mxu1 }
 0x1f7   : > { %v1575_v7 = vadd.f32 %v1574_v1, %v1558_v60  ;;  %v1755_v23 = vadd.f32 %v1754_v14, %v1738_v39  ;;  %v1559_v52 = vmul.f32 %v1363_v25, %v1363_v25  ;;  %v1739_v8 = vmul.f32 %v1363_v25, %v3009_v53  ;;  %v1367_v58 = vpop.f32.mrb[7].mxu0  ;;  %v1493_v13 = vpop.f32.mrb[7].mxu1 }
 0x1f8   : > { %v1597_v50 = vadd.f32 %v1596_v3, %v1560_v26  ;;  %v1777_v59 = vadd.f32 %v1776_v32, %v1740_v4  ;;  %v1540_v61 = vadd.f32 %v1539_v22, %v1489_v35  ;;  %v1561_v34 = vmul.f32 %v1489_v35, %v1489_v35 }
 0x1f9   : > { %v1586_v44 = vadd.f32 %v1585_v5, %v1559_v52  ;;  %v1766_v27 = vadd.f32 %v1765_v15, %v1739_v8  ;;  %v1741_v56 = vmul.f32 %v1489_v35, %v3096_v55  ;;  %v1508_v46 = vadd.f32 %v1507_v31, %v1365_v45 }
 0x1fa   : > { %v1608_v41 = vadd.f32 %v1607_v18, %v1561_v34  ;;  %v1562_v0 = vmul.f32 %v1365_v45, %v1365_v45  ;;  %v1742_v2 = vmul.f32 %v1365_v45, %v3019_v42  ;;  %v1530_v1 = vadd.f32 %v1529_v40, %v1491_v49 }
 0x1fb   : > { %v1788_v14 = vadd.f32 %v1787_v28, %v1741_v56  ;;  %v1564_v6 = vmul.f32 %v1491_v49, %v1491_v49  ;;  %v1744_v53 = vmul.f32 %v1491_v49, %v3026_v43  ;;  %v1519_v20 = vadd.f32 %v1518_v57, %v1367_v58 }
 0x1fc   : > { %v1576_v33 = vadd.f32 %v1575_v7, %v1562_v0  ;;  %v1756_v3 = vadd.f32 %v1755_v23, %v1742_v2  ;;  %v1563_v32 = vmul.f32 %v1367_v58, %v1367_v58  ;;  %v1743_v22 = vmul.f32 %v1367_v58, %v3041_v10  ;;  %v1371_v5 = vpop.f32.mrb[8].mxu0  ;;  %v1497_v15 = vpop.f32.mrb[8].mxu1 }
 0x1fd   : > { %v1598_v60 = vadd.f32 %v1597_v50, %v1564_v6  ;;  %v1778_v55 = vadd.f32 %v1777_v59, %v1744_v53  ;;  %v1541_v31 = vadd.f32 %v1540_v61, %v1493_v13  ;;  %v1565_v18 = vmul.f32 %v1493_v13, %v1493_v13  ;;  %v1373_v39 = vpop.f32.mrb[9].mxu0  ;;  %v1499_v25 = vpop.f32.mrb[9].mxu1 }
 0x1fe   : > { %v1587_v42 = vadd.f32 %v1586_v44, %v1563_v32  ;;  %v1767_v35 = vadd.f32 %v1766_v27, %v1743_v22  ;;  %v1745_v28 = vmul.f32 %v1493_v13, %v3115_v9  ;;  %v1509_v40 = vadd.f32 %v1508_v46, %v1371_v5  ;;  %v1375_v43 = vpop.f32.mrb[10].mxu0  ;;  %v1501_v26 = vpop.f32.mrb[10].mxu1 }
 0x1ff   : > { %v1609_v4 = vadd.f32 %v1608_v41, %v1565_v18  ;;  %v1566_v57 = vmul.f32 %v1371_v5, %v1371_v5  ;;  %v1746_v45 = vmul.f32 %v1371_v5, %v3047_v12  ;;  %v1531_v10 = vadd.f32 %v1530_v1, %v1497_v15  ;;  %v3170_v49 = vpop.f32.mrb[11].mxu0  ;;  %v3172_v7 = vpop.f32.mrb[11].mxu1 }
 0x200   : > { %v1789_v23 = vadd.f32 %v1788_v14, %v1745_v28  ;;  %v1568_v52 = vmul.f32 %v1497_v15, %v1497_v15  ;;  %v1748_v8 = vmul.f32 %v1497_v15, %v3053_v17  ;;  %v1520_v58 = vadd.f32 %v1519_v20, %v1373_v39 }
 0x201   : > { %v1577_v50 = vadd.f32 %v1576_v33, %v1566_v57  ;;  %v1757_v59 = vadd.f32 %v1756_v3, %v1746_v45  ;;  %v1567_v9 = vmul.f32 %v1373_v39, %v1373_v39  ;;  %v1747_v13 = vmul.f32 %v1373_v39, %v3072_v37 }
 0x202   : > { %v1599_v61 = vadd.f32 %v1598_v60, %v1568_v52  ;;  %v1779_v34 = vadd.f32 %v1778_v55, %v1748_v8  ;;  %v3176_v44 = vadd.f32 %v1541_v31, %v1499_v25  ;;  %v1569_v12 = vmul.f32 %v1499_v25, %v1499_v25 }
 0x203   : > { %v1588_v27 = vadd.f32 %v1587_v42, %v1567_v9  ;;  %v3178_v56 = vadd.f32 %v1767_v35, %v1747_v13  ;;  %v1749_v46 = vmul.f32 %v1499_v25, %v3122_v54  ;;  %v1510_v41 = vadd.f32 %v1509_v40, %v1375_v43 }
 0x204   : > { %v3181_v0 = vadd.f32 %v1609_v4, %v1569_v12  ;;  %v1570_v17 = vmul.f32 %v1375_v43, %v1375_v43  ;;  %v1750_v2 = vmul.f32 %v1375_v43, %v3076_v38  ;;  %v1532_v1 = vadd.f32 %v1531_v10, %v1501_v26 }
 0x205   : > { %v3184_v14 = vadd.f32 %v1789_v23, %v1749_v46  ;;  %v1511_v37 = vrot.slane %v1510_v41, 4  ;;  %v1572_v6 = vmul.f32 %v1501_v26, %v1501_v26  ;;  %v1752_v53 = vmul.f32 %v1501_v26, %v3080_v48 }
 0x206   : > { %v1578_v20 = vadd.f32 %v1577_v50, %v1570_v17  ;;  %v1758_v33 = vadd.f32 %v1757_v59, %v1750_v2  ;;  %v1533_v3 = vrot.slane %v1532_v1, 4  ;;  %v1521_v32 = vadd.f32 %v1520_v58, %v3170_v49 }
 0x207   : > { %v1512_v22 = vadd.f32 %v1511_v37, %v1510_v41  ;;  %v1600_v54 = vadd.f32 %v1599_v61, %v1572_v6  ;;  %v1780_v5 = vadd.f32 %v1779_v34, %v1752_v53  ;;  %v1571_v15 = vmul.f32 %v3170_v49, %v3170_v49 }
 0x208   : > { %v1579_v60 = vrot.slane %v1578_v20, 4  ;;  %v1759_v38 = vrot.slane %v1758_v33, 4  ;;  %v1534_v55 = vadd.f32 %v1533_v3, %v1532_v1  ;;  %v1522_v31 = vrot.slane %v1521_v32, 4 }
 0x209   : > { %v1513_v18 = vrot.slane %v1512_v22, 2  ;;  %v1601_v39 = vrot.slane %v1600_v54, 4  ;;  %v1781_v25 = vrot.slane %v1780_v5, 4  ;;  %v1589_v48 = vadd.f32 %v1588_v27, %v1571_v15 }
 0x20a   : > { %v1580_v42 = vadd.f32 %v1579_v60, %v1578_v20  ;;  %v1760_v35 = vadd.f32 %v1759_v38, %v1758_v33  ;;  %v1535_v28 = vrot.slane %v1534_v55, 2  ;;  %v1523_v40 = vadd.f32 %v1522_v31, %v1521_v32 }
 0x20b   : > { %v1514_v43 = vadd.f32 %v1513_v18, %v1512_v22  ;;  %v1602_v26 = vadd.f32 %v1601_v39, %v1600_v54  ;;  %v1782_v4 = vadd.f32 %v1781_v25, %v1780_v5  ;;  %v1590_v57 = vrot.slane %v1589_v48, 4 }
 0x20c   : > { %v1581_v45 = vrot.slane %v1580_v42, 2  ;;  %v1761_v10 = vrot.slane %v1760_v35, 2  ;;  %v1536_v23 = vadd.f32 %v1535_v28, %v1534_v55  ;;  %v1524_v52 = vrot.slane %v1523_v40, 2 }
 0x20d   : > { %v1515_v8 = vrot.slane %v1514_v43, 1  ;;  %v1603_v58 = vrot.slane %v1602_v26, 2  ;;  %v1783_v50 = vrot.slane %v1782_v4, 2  ;;  %v1591_v59 = vadd.f32 %v1590_v57, %v1589_v48  ;;  %v1800_v57 = vld [vmem:[#allocation8 + $0x10] sm:$0xff] }
 0x20e   : > { %v1582_v9 = vadd.f32 %v1581_v45, %v1580_v42  ;;  %v1762_v13 = vadd.f32 %v1761_v10, %v1760_v35  ;;  %v1537_v61 = vrot.slane %v1536_v23, 1  ;;  %v1525_v34 = vadd.f32 %v1524_v52, %v1523_v40 }
 0x20f   : > { %v1516_v12 = vadd.f32 %v1515_v8, %v1514_v43  ;;  %v1604_v27 = vadd.f32 %v1603_v58, %v1602_v26  ;;  %v1784_v46 = vadd.f32 %v1783_v50, %v1782_v4  ;;  %v1592_v41 = vrot.slane %v1591_v59, 2  ;;  %v1798_v4 = vld [vmem:[#allocation8] sm:$0xff] }
 0x210   : > { %v1583_v17 = vrot.slane %v1582_v9, 1  ;;  %v1763_v2 = vrot.slane %v1762_v13, 1  ;;  %v1538_v1 = vadd.f32 %v1537_v61, %v1536_v23  ;;  %v1526_v37 = vrot.slane %v1525_v34, 1 }
 0x211   : > { %v1605_v6 = vrot.slane %v1604_v27, 1  ;;  %v1785_v53 = vrot.slane %v1784_v46, 1  ;;  %v1593_v20 = vadd.f32 %v1592_v41, %v1591_v59  ;;  %v1751_v33 = vmul.f32 %v3170_v49, %v3104_v62 }
 0x212   : > { %v1584_v3 = vadd.f32 %v1583_v17, %v1582_v9  ;;  %v1764_v32 = vadd.f32 %v1763_v2, %v1762_v13  ;;  %v1527_v22 = vadd.f32 %v1526_v37, %v1525_v34  ;;  %v1543_v54 = vadd.f32 %v3176_v44, %v3172_v7 }
 0x213   : > { %v1606_v5 = vadd.f32 %v1605_v6, %v1604_v27  ;;  %v1786_v15 = vadd.f32 %v1785_v53, %v1784_v46  ;;  %v1594_v60 = vrot.slane %v1593_v20, 1  ;;  %v1769_v38 = vadd.f32 %v3178_v56, %v1751_v33 }
 0x214   : > { %v1803_v55 = vsel %vm1802_vm12, %v1516_v12, %v1584_v3  ;;  %v1544_v31 = vrot.slane %v1543_v54, 4  ;;  %v1573_v18 = vmul.f32 %v3172_v7, %v3172_v7  ;;  %v1753_v62 = vmul.f32 %v3172_v7, %v3130_v51 }
 0x215   : > { %v1808_v49 = vsel %vm1807_vm13, %v1803_v55, %v3135_v11  ;;  %v1805_v39 = vsel %vm1802_vm12, %v1538_v1, %v1606_v5  ;;  %v1595_v44 = vadd.f32 %v1594_v60, %v1593_v20  ;;  %v1770_v25 = vrot.slane %v1769_v38, 4 }
 0x216   : > { %v1810_v48 = vsel %vm1807_vm13, %v1805_v39, %v3137_v63  ;;  %v1545_v56 = vadd.f32 %v1544_v31, %v1543_v54  ;;  %v1611_v42 = vadd.f32 %v3181_v0, %v1573_v18  ;;  %v1791_v35 = vadd.f32 %v3184_v14, %v1753_v62 }
 0x217   : > { %v1771_v28 = vadd.f32 %v1770_v25, %v1769_v38  ;;  %v1804_v40 = vsel %vm1802_vm12, %v1527_v22, %v1595_v44  ;;  %v1813_v51 = vsel %vm1812_vm14, %v1808_v49, %v3139_v19  ;;  %v1815_v11 = vsel %vm1812_vm14, %v1810_v48, %v3141_v21  ;;  %v1801_v22 = vld [vmem:[#allocation8 + $0x18] sm:$0xff] }
 0x218   : > { %v1546_v7 = vrot.slane %v1545_v56, 2  ;;  %v1612_v43 = vrot.slane %v1611_v42, 4  ;;  %v1659_v63 = vadd.f32 %v1658_v30, %v3143_v29  ;;  %v1792_v26 = vrot.slane %v1791_v35, 4 }
 0x219   : > { %v1772_v0 = vrot.slane %v1771_v28, 2  ;;  %v1727_v14 = vadd.f32 %v1726_v24, %v3146_v47  ;;  %v1818_v45 = vsel %vm1817_vm15, %v1813_v51, %v1764_v32  ;;  %v1820_v19 = vsel %vm1817_vm15, %v1815_v11, %v1786_v15 }
 0x21a   : > { %v1547_v10 = vadd.f32 %v1546_v7, %v1545_v56  ;;  %v1613_v21 = vadd.f32 %v1612_v43, %v1611_v42  ;;  %v1793_v23 = vadd.f32 %v1792_v26, %v1791_v35  ;;  %v1823_v52 = vsel %vm1822_vm0, %v1818_v45, 0.0 }
 0x21b   : > { %v1773_v8 = vadd.f32 %v1772_v0, %v1771_v28  ;;  %v1809_v29 = vsel %vm1807_vm13, %v1804_v40, %v3155_v16  ;;  %v1825_v30 = vsel %vm1822_vm0, %v1820_v19, 0.0  ;;  %v1827_v58 = vadd.f32 %v1823_v52, %v1798_v4  ;;  %v1799_v16 = vld [vmem:[#allocation8 + $0x8] sm:$0xff] }
 0x21c   : > { %v1614_v50 = vrot.slane %v1613_v21, 2  ;;  %v1794_v59 = vrot.slane %v1793_v23, 2  ;;  %v1829_v47 = vadd.f32 %v1825_v30, %v1800_v57  ;;  %v1660_v9 = vrot.slane %v1659_v63, 1 }
 0x21d   : > { %v1774_v24 = vrot.slane %v1773_v8, 1  ;;  %v1728_v13 = vrot.slane %v1727_v14, 1  ;;  %1831 = vst [vmem:[#allocation8] sm:$0xff] %v1827_v58  ;;  %v1548_v61 = vrot.slane %v1547_v10, 1  ;;  %v1814_v27 = vsel %vm1812_vm14, %v1809_v29, %v3157_v36 }
 0x21e   : > { %v1615_v34 = vadd.f32 %v1614_v50, %v1613_v21  ;;  %v1795_v12 = vadd.f32 %v1794_v59, %v1793_v23  ;;  %1833 = vst [vmem:[#allocation8 + $0x10] sm:$0xff] %v1829_v47  ;;  %v1661_v17 = vadd.f32 %v1660_v9, %v1659_v63 }
 0x21f   : > { %v1775_v46 = vadd.f32 %v1774_v24, %v1773_v8  ;;  %v1549_v37 = vadd.f32 %v1548_v61, %v1547_v10  ;;  %v1729_v53 = vadd.f32 %v1728_v13, %v1727_v14 }
 0x220   : > { %v1616_v41 = vrot.slane %v1615_v34, 1  ;;  %v1796_v2 = vrot.slane %v1795_v12, 1 }
 0x221   : > { %v1819_v1 = vsel %vm1817_vm15, %v1814_v27, %v1775_v46 }
 0x222   : > { %v1617_v6 = vadd.f32 %v1616_v41, %v1615_v34  ;;  %v1824_v20 = vsel %vm1822_vm0, %v1819_v1, 0.0  ;;  %v1797_v32 = vadd.f32 %v1796_v2, %v1795_v12 }
 0x223   : > { %v1828_v33 = vadd.f32 %v1824_v20, %v1799_v16 }
 0x224   : > { %v1806_v3 = vsel %vm1802_vm12, %v1549_v37, %v1617_v6 }
 0x225   : > { %v1811_v36 = vsel %vm1807_vm13, %v1806_v3, %v1661_v17  ;;  %1832 = vst [vmem:[#allocation8 + $0x8] sm:$0xff] %v1828_v33 }
 0x226   : > { %v1816_v54 = vsel %vm1812_vm14, %v1811_v36, %v1729_v53 }
 0x227   : > { %v1821_v5 = vsel %vm1817_vm15, %v1816_v54, %v1797_v32 }
 0x228   : > { %v1826_v15 = vsel %vm1822_vm0, %v1821_v5, 0.0 }
 0x229   : > { %v1830_v60 = vadd.f32 %v1826_v15, %v1801_v22 }
 0x22b   : > { %1834 = vst [vmem:[#allocation8 + $0x18] sm:$0xff] %v1830_v60 }
 0x22c   : > { %2506 = shalt.err (!%p2503_p6)
}
 0x22d   : > { %s2507_s20 = scalar_lea.hbm %s3277_s3, 512 }
 0x22e   : > { %p2508_p9 = scmp.ne.s32.totalorder %s3277_s3, %s2507_s20  ;;  %p2513_p5 = scmp.lt.u32.totalorder %s2507_s20, %s3277_s3 }
 0x230   : > { %p2509_p7 = pnand %p2508_p9, %p2158_p3 }
 0x232   : > { %p2510_p11 = pneg %p2509_p7 }
 0x234   : > { %p2515_p13 = pnand %p2513_p5, %p2510_p11 }
 0x236   : > { %2518 = shalt.err (!%p2515_p13)
}
 0x237   : > { %2149 = dma.vmem_to_hbm [thread:$0]  (%p2158_p3), %s1846_s25, 512, %s3277_s3, [#allocation4]  }
 0x238   : > { %2556 = dma.done.wait (%p2158_p3), [#allocation4], 512  }
 0x239   : > { %2558 = vsyncadd (%p2158_p3), [#allocation4], 4294966784 }
 0x23a PF: > { %s20_s17 = sadd.s32 1, %s2581_s17   ;;  %s3303_s12 = smov %s2565_s13 }
 0x23b   : > { %p17_p1 = scmp.ge.s32.totalorder %s20_s17, 4   ;;  %s3304_s13 = smov %s2569_s14 }
 0x23c   : > { %s3305_s14 = smov %s2669_s24  ;;  %s3306_s15 = smov %s2577_s16 }
 0x23d   : > { %s3307_s16 = smov %s3309_s19  ;;  %19 = sbr.rel (!%p17_p1) target bundleno = 7 (0x7), region = 91 }
 0x244   :  { %1858 = vsyncpa [#allocation3], 1 }
 0x245   :  { %1860 = vsyncpa [#allocation3 + $0x1], 1 }
 0x246   :  { %1861 = vsyncpa [#allocation6], 1 }
 0x247   :  { %1863 = vsyncpa [#allocation6 + $0x1], 1 }
 0x248   :  { %1864 = vsyncpa [#allocation4], 1 }
 0x249   :  { %1866 = vsyncpa [#allocation4 + $0x1], 1 }

</bundles_post_ra>
